<compile_context>
chip_gen: v6e
topology: v6e:2x2x1
jax: 0.10.0
libtpu: 0.0.40
codegen_flags: <defaults>
</compile_context>

<pallas_src>
import functools
import math

import jax
import jax.numpy as jnp
from jax.experimental import pallas as pl
from jax.experimental.pallas import tpu as pltpu

LN_EPS = 1e-12                       # DistilBERT LayerNorm eps
_VMEM_LIMIT = 48 * 1024 * 1024       # scoped VMEM limit (fits v7x's 64 MiB/TC)
_TM, _TN, _TK = 256, 512, 512        # tile targets; actual tiles adapt to shapes


def _pick_tile(dim, target, quantum):
    """Largest multiple of `quantum` <= `target` that divides `dim`, else full dim."""
    if dim <= target:
        return dim
    t = (target // quantum) * quantum
    while t >= quantum:
        if dim % t == 0:
            return t
        t -= quantum
    return dim


def _gelu(x):
    # tanh-form GELU: runs on the EUP (own VLIW slot, overlaps MXU/VPU work).
    # ~1e-3 abs error vs the exact erf GELU used by HF DistilBERT.
    c = math.sqrt(2.0 / math.pi)
    return 0.5 * x * (1.0 + jnp.tanh(c * (x + 0.044715 * x * x * x)))


# ----------------------------- Pallas kernels -----------------------------

def _dense_kernel(x_ref, w_ref, b_ref, o_ref, acc_ref, *, activation):
    @pl.when(pl.program_id(2) == 0)
    def _():
        acc_ref[...] = jnp.zeros_like(acc_ref)

    acc_ref[...] += jnp.dot(x_ref[...].astype(jnp.bfloat16), w_ref[...],
                            preferred_element_type=jnp.float32)

    @pl.when(pl.program_id(2) == pl.num_programs(2) - 1)
    def _():
        y = acc_ref[...] + b_ref[...]
        if activation == "gelu":
            y = _gelu(y)
        o_ref[...] = y


def dense(x, w, b, activation=None):
    """y = act(x @ w + b).  x:[M,K] f32, w:[K,N] bf16, b:[N] f32 -> [M,N] f32."""
    M, K = x.shape
    N = w.shape[1]
    tm = _pick_tile(M, _TM, 8)
    tn = _pick_tile(N, _TN, 128)
    tk = _pick_tile(K, _TK, 128)
    grid = (M // tm, N // tn, K // tk)
    cost = pl.CostEstimate(
        flops=2 * M * N * K,
        transcendentals=(M * N if activation == "gelu" else 0),
        bytes_accessed=M * K * 4 + K * N * 2 + M * N * 4 + N * 4)
    return pl.pallas_call(
        functools.partial(_dense_kernel, activation=activation),
        out_shape=jax.ShapeDtypeStruct((M, N), jnp.float32),
        grid_spec=pltpu.PrefetchScalarGridSpec(
            num_scalar_prefetch=0,
            grid=grid,
            in_specs=[
                pl.BlockSpec((tm, tk), lambda i, j, k: (i, k)),
                pl.BlockSpec((tk, tn), lambda i, j, k: (k, j)),
                pl.BlockSpec((1, tn), lambda i, j, k: (0, j)),
            ],
            out_specs=pl.BlockSpec((tm, tn), lambda i, j, k: (i, j)),
            scratch_shapes=[pltpu.VMEM((tm, tn), jnp.float32)],
        ),
        compiler_params=pltpu.CompilerParams(
            dimension_semantics=("parallel", "parallel", "arbitrary"),
            vmem_limit_bytes=_VMEM_LIMIT),
        cost_estimate=cost,
    )(x, w, b.reshape(1, N))


def _dense_add_ln_kernel(x_ref, w_ref, b_ref, r_ref, g_ref, bb_ref, o_ref, acc_ref):
    @pl.when(pl.program_id(1) == 0)
    def _():
        acc_ref[...] = jnp.zeros_like(acc_ref)

    acc_ref[...] += jnp.dot(x_ref[...].astype(jnp.bfloat16), w_ref[...],
                            preferred_element_type=jnp.float32)

    @pl.when(pl.program_id(1) == pl.num_programs(1) - 1)
    def _():
        y = acc_ref[...] + b_ref[...] + r_ref[...]
        mu = jnp.mean(y, axis=-1, keepdims=True)
        var = jnp.mean(jnp.square(y - mu), axis=-1, keepdims=True)
        o_ref[...] = (y - mu) * jax.lax.rsqrt(var + LN_EPS) * g_ref[...] + bb_ref[...]


def dense_add_ln(x, w, b, residual, gamma, beta):
    """LayerNorm(x @ w + b + residual), fused in one kernel.

    N (=hidden) is kept whole in the output tile so the last-axis LN reduction
    stays in-kernel; M is tiled (parallel), K is the accumulation axis.
    """
    M, K = x.shape
    N = w.shape[1]
    tm = _pick_tile(M, _TM, 8)
    tk = _pick_tile(K, _TK, 128)
    grid = (M // tm, K // tk)
    cost = pl.CostEstimate(
        flops=2 * M * N * K + 8 * M * N,
        transcendentals=M,
        bytes_accessed=M * K * 4 + K * N * 2 + 2 * M * N * 4 + 3 * N * 4)
    return pl.pallas_call(
        _dense_add_ln_kernel,
        out_shape=jax.ShapeDtypeStruct((M, N), jnp.float32),
        grid_spec=pltpu.PrefetchScalarGridSpec(
            num_scalar_prefetch=0,
            grid=grid,
            in_specs=[
                pl.BlockSpec((tm, tk), lambda i, k: (i, k)),   # x
                pl.BlockSpec((tk, N), lambda i, k: (k, 0)),    # w
                pl.BlockSpec((1, N), lambda i, k: (0, 0)),     # bias
                pl.BlockSpec((tm, N), lambda i, k: (i, 0)),    # residual
                pl.BlockSpec((1, N), lambda i, k: (0, 0)),     # gamma
                pl.BlockSpec((1, N), lambda i, k: (0, 0)),     # beta
            ],
            out_specs=pl.BlockSpec((tm, N), lambda i, k: (i, 0)),
            scratch_shapes=[pltpu.VMEM((tm, N), jnp.float32)],
        ),
        compiler_params=pltpu.CompilerParams(
            dimension_semantics=("parallel", "arbitrary"),
            vmem_limit_bytes=_VMEM_LIMIT),
        cost_estimate=cost,
    )(x, w, b.reshape(1, N), residual, gamma.reshape(1, N), beta.reshape(1, N))


def _ln_kernel(x_ref, g_ref, b_ref, o_ref):
    y = x_ref[...]
    mu = jnp.mean(y, axis=-1, keepdims=True)
    var = jnp.mean(jnp.square(y - mu), axis=-1, keepdims=True)
    o_ref[...] = (y - mu) * jax.lax.rsqrt(var + LN_EPS) * g_ref[...] + b_ref[...]


def layernorm(x, gamma, beta):
    """Plain LayerNorm along the last axis (no dummy zero residual)."""
    M, H = x.shape
    tm = _pick_tile(M, 2 * _TM, 8)
    return pl.pallas_call(
        _ln_kernel,
        out_shape=jax.ShapeDtypeStruct((M, H), jnp.float32),
        grid_spec=pltpu.PrefetchScalarGridSpec(
            num_scalar_prefetch=0,
            grid=(M // tm,),
            in_specs=[
                pl.BlockSpec((tm, H), lambda i: (i, 0)),
                pl.BlockSpec((1, H), lambda i: (0, 0)),
                pl.BlockSpec((1, H), lambda i: (0, 0)),
            ],
            out_specs=pl.BlockSpec((tm, H), lambda i: (i, 0)),
        ),
        compiler_params=pltpu.CompilerParams(
            dimension_semantics=("parallel",),
            vmem_limit_bytes=_VMEM_LIMIT),
    )(x, gamma.reshape(1, H), beta.reshape(1, H))


def _attention_kernel(mask_ref, qkv_ref, o_ref, *, n_heads):
    qkv = qkv_ref[0]                      # (S, 3H) f32; softmax scale folded into Q
    keep = mask_ref[0] > 0.5              # (1, S) -> broadcasts over query rows
    hidden = qkv.shape[-1] // 3
    d_head = hidden // n_heads
    neg = jnp.finfo(jnp.float32).min

    ctx = []
    for h in range(n_heads):              # static unroll; heads split in-kernel
        lo = h * d_head
        qh = qkv[:, lo:lo + d_head].astype(jnp.bfloat16)
        kh = qkv[:, hidden + lo:hidden + lo + d_head].astype(jnp.bfloat16)
        vh = qkv[:, 2 * hidden + lo:2 * hidden + lo + d_head].astype(jnp.bfloat16)
        s = jax.lax.dot_general(qh, kh, (((1,), (1,)), ((), ())),
                                preferred_element_type=jnp.float32)   # (S, S)
        s = jnp.where(keep, s, neg)
        m = jnp.max(s, axis=-1, keepdims=True)
        e = jnp.exp(s - m)
        p = e * pl.reciprocal(jnp.sum(e, axis=-1, keepdims=True), approx=True)
        ctx.append(jnp.dot(p.astype(jnp.bfloat16), vh,
                           preferred_element_type=jnp.float32))       # (S, dH)
    # Lane-dense (S, H) store: heads re-concatenated on the last axis, so the
    # wrapper needs no transpose and the HBM writeback is full-lane.
    o_ref[0] = jnp.concatenate(ctx, axis=-1)


def mha_attention(qkv, mask_f, *, n_heads):
    """qkv: [B, S, 3H] (Q columns pre-scaled by 1/sqrt(d_head)); mask_f: [B, 1, S]."""
    B, S, H3 = qkv.shape
    H = H3 // 3
    cost = pl.CostEstimate(
        flops=4 * B * S * S * H,
        transcendentals=B * n_heads * S * S,
        bytes_accessed=B * S * H3 * 4 + B * S * 4 + B * S * H * 4)
    return pl.pallas_call(
        functools.partial(_attention_kernel, n_heads=n_heads),
        out_shape=jax.ShapeDtypeStruct((B, S, H), jnp.float32),
        grid_spec=pltpu.PrefetchScalarGridSpec(
            num_scalar_prefetch=0,
            grid=(B,),
            in_specs=[
                pl.BlockSpec((1, 1, S), lambda b: (b, 0, 0)),
                pl.BlockSpec((1, S, H3), lambda b: (b, 0, 0)),
            ],
            out_specs=pl.BlockSpec((1, S, H), lambda b: (b, 0, 0)),
        ),
        compiler_params=pltpu.CompilerParams(
            dimension_semantics=("parallel",),
            vmem_limit_bytes=_VMEM_LIMIT),
        cost_estimate=cost,
    )(mask_f, qkv)


# ----------------------------- model glue -----------------------------

def init_params(key, vocab_size, max_pos, hidden, ffn_dim, n_layers, n_heads):
    d_head = hidden // n_heads
    scale = 1.0 / math.sqrt(d_head)
    keys = jax.random.split(key, 2 + 6 * n_layers)
    init = lambda k, shape: 0.02 * jax.random.normal(k, shape, dtype=jnp.float32)
    ones = lambda n: jnp.ones((n,), jnp.float32)
    zeros = lambda n: jnp.zeros((n,), jnp.float32)
    params = {
        "word_emb": init(keys[0], (vocab_size, hidden)),
        "pos_emb": init(keys[1], (max_pos, hidden)),
        "emb_ln_g": ones(hidden),
        "emb_ln_b": zeros(hidden),
        "layers": [],
    }
    for i in range(n_layers):
        b = 2 + 6 * i
        q_w = init(keys[b + 0], (hidden, hidden))
        k_w = init(keys[b + 1], (hidden, hidden))
        v_w = init(keys[b + 2], (hidden, hidden))
        o_w = init(keys[b + 3], (hidden, hidden))
        # Fused QKV projection weight [H, 3H]; the 1/sqrt(d_head) softmax scale
        # is folded into the Q columns.  Matmul weights stored in bf16 (MXU-native);
        # biases / LN params stay f32.  (nn.Linear stores [out,in]; we store [in,out].)
        qkv_w = jnp.concatenate([q_w * scale, k_w, v_w], axis=1)
        params["layers"].append({
            "qkv_w": qkv_w.astype(jnp.bfloat16), "qkv_b": zeros(3 * hidden),
            "o_w": o_w.astype(jnp.bfloat16), "o_b": zeros(hidden),
            "sa_ln_g": ones(hidden), "sa_ln_b": zeros(hidden),
            "ff1_w": init(keys[b + 4], (hidden, ffn_dim)).astype(jnp.bfloat16),
            "ff1_b": zeros(ffn_dim),
            "ff2_w": init(keys[b + 5], (ffn_dim, hidden)).astype(jnp.bfloat16),
            "ff2_b": zeros(hidden),
            "out_ln_g": ones(hidden), "out_ln_b": zeros(hidden),
        })
    return params


def text_encoder_forward(params, input_ids, attention_mask, *, n_heads):
    B, S = input_ids.shape
    H = params["word_emb"].shape[1]

    # Embedding gather + add stays in XLA (glue); everything else runs in Pallas.
    emb = params["word_emb"][input_ids] + params["pos_emb"][:S][None, :, :]
    x = emb.reshape(B * S, H).astype(jnp.float32)
    h = layernorm(x, params["emb_ln_g"], params["emb_ln_b"])

    mask_f = attention_mask.astype(jnp.float32).reshape(B, 1, S)

    for layer in params["layers"]:
        # --- multi-head self-attention (fused QKV proj, heads split in-kernel) ---
        qkv = dense(h, layer["qkv_w"], layer["qkv_b"])                  # [B*S, 3H]
        ctx = mha_attention(qkv.reshape(B, S, 3 * H), mask_f, n_heads=n_heads)
        h = dense_add_ln(ctx.reshape(B * S, H), layer["o_w"], layer["o_b"],
                         h, layer["sa_ln_g"], layer["sa_ln_b"])
        # --- feed-forward (GELU fused into ff1, residual+LN fused into ff2) ---
        ff = dense(h, layer["ff1_w"], layer["ff1_b"], activation="gelu")
        h = dense_add_ln(ff, layer["ff2_w"], layer["ff2_b"],
                         h, layer["out_ln_g"], layer["out_ln_b"])

    return h.reshape(B, S, H)[:, 0, :]     # target_token_idx = 0 (CLS embedding)


def reference_forward(params, input_ids, attention_mask, *, n_heads):
    """Pure-JAX mirror of the Pallas math (same bf16 matmul casts) for validation."""
    B, S = input_ids.shape
    H = params["word_emb"].shape[1]
    dH = H // n_heads

    def ln(y, g, b):
        mu = jnp.mean(y, -1, keepdims=True)
        var = jnp.mean(jnp.square(y - mu), -1, keepdims=True)
        return (y - mu) * jax.lax.rsqrt(var + LN_EPS) * g + b

    def mm(a, w):
        return jnp.dot(a.astype(jnp.bfloat16), w, preferred_element_type=jnp.float32)

    emb = params["word_emb"][input_ids] + params["pos_emb"][:S][None, :, :]
    h = ln(emb.reshape(B * S, H).astype(jnp.float32),
           params["emb_ln_g"], params["emb_ln_b"])
    mask = attention_mask.reshape(B, 1, 1, S) > 0

    for L in params["layers"]:
        qkv = mm(h, L["qkv_w"]) + L["qkv_b"]
        q, k, v = jnp.split(qkv, 3, axis=-1)
        sh = lambda t: t.reshape(B, S, n_heads, dH).transpose(0, 2, 1, 3)
        q, k, v = sh(q), sh(k), sh(v)
        s = jnp.einsum("bhqd,bhkd->bhqk", q.astype(jnp.bfloat16),
                       k.astype(jnp.bfloat16), preferred_element_type=jnp.float32)
        s = jnp.where(mask, s, jnp.finfo(jnp.float32).min)
        p = jax.nn.softmax(s, axis=-1)
        ctx = jnp.einsum("bhqk,bhkd->bhqd", p.astype(jnp.bfloat16),
                         v.astype(jnp.bfloat16), preferred_element_type=jnp.float32)
        ctx = ctx.transpose(0, 2, 1, 3).reshape(B * S, H)
        h = ln(mm(ctx, L["o_w"]) + L["o_b"] + h, L["sa_ln_g"], L["sa_ln_b"])
        ff = _gelu(mm(h, L["ff1_w"]) + L["ff1_b"])
        h = ln(mm(ff, L["ff2_w"]) + L["ff2_b"] + h, L["out_ln_g"], L["out_ln_b"])
    return h.reshape(B, S, H)[:, 0, :]


if __name__ == "__main__":
    # small shapes consistent with the module's forward (token ids + mask in,
    # [B, H] CLS embedding out)
    B, S, H, N_HEADS, FFN, N_LAYERS = 2, 8, 32, 4, 64, 2
    VOCAB, MAX_POS = 100, 16

    key = jax.random.PRNGKey(0)
    k_param, k_ids = jax.random.split(key)

    params = init_params(k_param, VOCAB, MAX_POS, H, FFN, N_LAYERS, N_HEADS)
    input_ids = jax.random.randint(k_ids, (B, S), 0, VOCAB, dtype=jnp.int32)
    attention_mask = jnp.ones((B, S), dtype=jnp.int32).at[1, 6:].set(0)  # ragged mask

    fwd = jax.jit(functools.partial(text_encoder_forward, n_heads=N_HEADS))
    out = jax.block_until_ready(fwd(params, input_ids, attention_mask))

    assert out.shape == (B, H), out.shape
    assert out.dtype == jnp.float32
    assert bool(jnp.all(jnp.isfinite(out)))

    # tolerance-check the Pallas path against a pure-JAX mirror of the same math
    ref = jax.jit(functools.partial(reference_forward, n_heads=N_HEADS))(
        params, input_ids, attention_mask)
    err = float(jnp.max(jnp.abs(out - ref)))
    assert err < 5e-2, f"max abs err vs reference: {err}"

    print("KERNEL_OK")
</pallas_src>

<mosaic_0001>
module attributes {stable_mosaic.version = 11 : i64} {
  func.func @_ln_kernel(%arg0: i32, %arg1: memref<16x32xf32, #tpu.memory_space<vmem>>, %arg2: memref<1x32xf32, #tpu.memory_space<vmem>>, %arg3: memref<1x32xf32, #tpu.memory_space<vmem>>, %arg4: memref<16x32xf32, #tpu.memory_space<vmem>>) attributes {dimension_semantics = [#tpu.dimension_semantics<parallel>], iteration_bounds = array<i64: 1>, scalar_prefetch = 0 : i64, scratch_operands = 0 : i64, tpu.core_type = #tpu.core_type<tc>, window_params = [{transform_indices = @transform_0, window_bounds = array<i64: 16, 32>}, {pipeline_mode = #tpu.pipeline_mode<synchronous>, transform_indices = @transform_1, window_bounds = array<i64: 1, 32>}, {pipeline_mode = #tpu.pipeline_mode<synchronous>, transform_indices = @transform_2, window_bounds = array<i64: 1, 32>}, {transform_indices = @transform_3, window_bounds = array<i64: 16, 32>}]} {
    %c0 = arith.constant 0 : index
    %c0_0 = arith.constant 0 : index
    %0 = vector.load %arg1[%c0, %c0_0] : memref<16x32xf32, #tpu.memory_space<vmem>>, vector<16x32xf32>
    %cst = arith.constant dense<0.000000e+00> : vector<16xf32>
    %1 = vector.multi_reduction <add>, %0, %cst [1] : vector<16x32xf32> to vector<16xf32>
    %2 = vector.shape_cast %1 : vector<16xf32> to vector<16x1xf32>
    %cst_1 = arith.constant 3.200000e+01 : f32
    %3 = vector.broadcast %cst_1 : f32 to vector<16x1xf32>
    %4 = arith.divf %2, %3 : vector<16x1xf32>
    %5 = vector.broadcast %4 : vector<16x1xf32> to vector<16x32xf32>
    %6 = arith.subf %0, %5 : vector<16x32xf32>
    %7 = arith.mulf %6, %6 : vector<16x32xf32>
    %cst_2 = arith.constant dense<0.000000e+00> : vector<16xf32>
    %8 = vector.multi_reduction <add>, %7, %cst_2 [1] : vector<16x32xf32> to vector<16xf32>
    %9 = vector.shape_cast %8 : vector<16xf32> to vector<16x1xf32>
    %cst_3 = arith.constant 3.200000e+01 : f32
    %10 = vector.broadcast %cst_3 : f32 to vector<16x1xf32>
    %11 = arith.divf %9, %10 : vector<16x1xf32>
    %12 = vector.broadcast %4 : vector<16x1xf32> to vector<16x32xf32>
    %13 = arith.subf %0, %12 : vector<16x32xf32>
    %cst_4 = arith.constant 9.99999996E-13 : f32
    %14 = vector.broadcast %cst_4 : f32 to vector<16x1xf32>
    %15 = arith.addf %11, %14 : vector<16x1xf32>
    %16 = math.rsqrt %15 : vector<16x1xf32>
    %17 = vector.broadcast %16 : vector<16x1xf32> to vector<16x32xf32>
    %18 = arith.mulf %13, %17 : vector<16x32xf32>
    %c0_5 = arith.constant 0 : index
    %c0_6 = arith.constant 0 : index
    %19 = vector.load %arg2[%c0_5, %c0_6] : memref<1x32xf32, #tpu.memory_space<vmem>>, vector<1x32xf32>
    %20 = vector.broadcast %19 : vector<1x32xf32> to vector<16x32xf32>
    %21 = arith.mulf %18, %20 : vector<16x32xf32>
    %c0_7 = arith.constant 0 : index
    %c0_8 = arith.constant 0 : index
    %22 = vector.load %arg3[%c0_7, %c0_8] : memref<1x32xf32, #tpu.memory_space<vmem>>, vector<1x32xf32>
    %23 = vector.broadcast %22 : vector<1x32xf32> to vector<16x32xf32>
    %24 = arith.addf %21, %23 : vector<16x32xf32>
    %c0_9 = arith.constant 0 : index
    %c0_10 = arith.constant 0 : index
    %25 = vector.load %arg4[%c0_9, %c0_10] : memref<16x32xf32, #tpu.memory_space<vmem>>, vector<16x32xf32>
    tpu.vector_store %arg4[%c0_9, %c0_10], %24 {strides = array<i32>} : memref<16x32xf32, #tpu.memory_space<vmem>>, vector<16x32xf32>,
    return
  }
  func.func @transform_0(%arg0: i32) -> (i32, i32) {
    %c0_i32 = arith.constant 0 : i32
    %c0_i32_0 = arith.constant 0 : i32
    return %arg0, %c0_i32 : i32, i32
  }
  func.func @transform_1(%arg0: i32) -> (i32, i32) {
    %c0_i32 = arith.constant 0 : i32
    %c0_i32_0 = arith.constant 0 : i32
    %c0_i32_1 = arith.constant 0 : i32
    return %c0_i32, %c0_i32_0 : i32, i32
  }
  func.func @transform_2(%arg0: i32) -> (i32, i32) {
    %c0_i32 = arith.constant 0 : i32
    %c0_i32_0 = arith.constant 0 : i32
    %c0_i32_1 = arith.constant 0 : i32
    return %c0_i32, %c0_i32_0 : i32, i32
  }
  func.func @transform_3(%arg0: i32) -> (i32, i32) {
    %c0_i32 = arith.constant 0 : i32
    %c0_i32_0 = arith.constant 0 : i32
    return %arg0, %c0_i32 : i32, i32
  }
}

module attributes {stable_mosaic.version = 11 : i64} {
  func.func @_dense_kernel(%arg0: i32, %arg1: i32, %arg2: i32, %arg3: memref<16x32xf32, #tpu.memory_space<vmem>>, %arg4: memref<32x96xbf16, #tpu.memory_space<vmem>>, %arg5: memref<1x96xf32, #tpu.memory_space<vmem>>, %arg6: memref<16x96xf32, #tpu.memory_space<vmem>>, %arg7: memref<16x96xf32, #tpu.memory_space<vmem>>) attributes {dimension_semantics = [#tpu.dimension_semantics<parallel>, #tpu.dimension_semantics<parallel>, #tpu.dimension_semantics<arbitrary>], iteration_bounds = array<i64: 1, 1, 1>, scalar_prefetch = 0 : i64, scratch_operands = 1 : i64, tpu.core_type = #tpu.core_type<tc>, window_params = [{transform_indices = @transform_0, window_bounds = array<i64: 16, 32>}, {transform_indices = @transform_1, window_bounds = array<i64: 32, 96>}, {transform_indices = @transform_2, window_bounds = array<i64: 1, 96>}, {transform_indices = @transform_3, window_bounds = array<i64: 16, 96>}]} {
    %c0_i32 = arith.constant 0 : i32
    %0 = arith.cmpi eq, %arg2, %c0_i32 : i32
    %1 = arith.extui %0 : i1 to i32
    %c0_i32_0 = arith.constant 0 : i32
    %2 = arith.cmpi ne, %1, %c0_i32_0 : i32
    scf.if %2 {
      %cst_10 = arith.constant 0.000000e+00 : f32
      %13 = vector.broadcast %cst_10 : f32 to vector<16x96xf32>
      %c0_11 = arith.constant 0 : index
      %c0_12 = arith.constant 0 : index
      %14 = vector.load %arg7[%c0_11, %c0_12] : memref<16x96xf32, #tpu.memory_space<vmem>>, vector<16x96xf32>
      tpu.vector_store %arg7[%c0_11, %c0_12], %13 {strides = array<i32>} : memref<16x96xf32, #tpu.memory_space<vmem>>, vector<16x96xf32>,
    } else {
    }
    %c0 = arith.constant 0 : index
    %c0_1 = arith.constant 0 : index
    %3 = vector.load %arg7[%c0, %c0_1] : memref<16x96xf32, #tpu.memory_space<vmem>>, vector<16x96xf32>
    %c0_2 = arith.constant 0 : index
    %c0_3 = arith.constant 0 : index
    %4 = vector.load %arg3[%c0_2, %c0_3] : memref<16x32xf32, #tpu.memory_space<vmem>>, vector<16x32xf32>
    %5 = arith.truncf %4 : vector<16x32xf32> to vector<16x32xbf16>
    %c0_4 = arith.constant 0 : index
    %c0_5 = arith.constant 0 : index
    %6 = vector.load %arg4[%c0_4, %c0_5] : memref<32x96xbf16, #tpu.memory_space<vmem>>, vector<32x96xbf16>
    %cst = arith.constant dense<0.000000e+00> : vector<16x96xf32>
    %7 = tpu.matmul %5, %6, %cst {dimension_numbers = #tpu.dot_dimension_numbers<[1], [0], [0], [1], [0, 0, 1, 1], [], []>} : vector<16x32xbf16>, vector<32x96xbf16>, vector<16x96xf32> -> vector<16x96xf32>
    %8 = arith.addf %3, %7 : vector<16x96xf32>
    %c0_6 = arith.constant 0 : index
    %c0_7 = arith.constant 0 : index
    %9 = vector.load %arg7[%c0_6, %c0_7] : memref<16x96xf32, #tpu.memory_space<vmem>>, vector<16x96xf32>
    tpu.vector_store %arg7[%c0_6, %c0_7], %8 {strides = array<i32>} : memref<16x96xf32, #tpu.memory_space<vmem>>, vector<16x96xf32>,
    %c0_i32_8 = arith.constant 0 : i32
    %10 = arith.cmpi eq, %arg2, %c0_i32_8 : i32
    %11 = arith.extui %10 : i1 to i32
    %c0_i32_9 = arith.constant 0 : i32
    %12 = arith.cmpi ne, %11, %c0_i32_9 : i32
    scf.if %12 {
      %c0_10 = arith.constant 0 : index
      %c0_11 = arith.constant 0 : index
      %13 = vector.load %arg7[%c0_10, %c0_11] : memref<16x96xf32, #tpu.memory_space<vmem>>, vector<16x96xf32>
      %c0_12 = arith.constant 0 : index
      %c0_13 = arith.constant 0 : index
      %14 = vector.load %arg5[%c0_12, %c0_13] : memref<1x96xf32, #tpu.memory_space<vmem>>, vector<1x96xf32>
      %15 = vector.broadcast %14 : vector<1x96xf32> to vector<16x96xf32>
      %16 = arith.addf %13, %15 : vector<16x96xf32>
      %c0_14 = arith.constant 0 : index
      %c0_15 = arith.constant 0 : index
      %17 = vector.load %arg6[%c0_14, %c0_15] : memref<16x96xf32, #tpu.memory_space<vmem>>, vector<16x96xf32>
      tpu.vector_store %arg6[%c0_14, %c0_15], %16 {strides = array<i32>} : memref<16x96xf32, #tpu.memory_space<vmem>>, vector<16x96xf32>,
    } else {
    }
    return
  }
  func.func @transform_0(%arg0: i32, %arg1: i32, %arg2: i32) -> (i32, i32) {
    %c0_i32 = arith.constant 0 : i32
    return %arg0, %arg2 : i32, i32
  }
  func.func @transform_1(%arg0: i32, %arg1: i32, %arg2: i32) -> (i32, i32) {
    %c0_i32 = arith.constant 0 : i32
    return %arg2, %arg1 : i32, i32
  }
  func.func @transform_2(%arg0: i32, %arg1: i32, %arg2: i32) -> (i32, i32) {
    %c0_i32 = arith.constant 0 : i32
    %c0_i32_0 = arith.constant 0 : i32
    return %c0_i32, %arg1 : i32, i32
  }
  func.func @transform_3(%arg0: i32, %arg1: i32, %arg2: i32) -> (i32, i32) {
    %c0_i32 = arith.constant 0 : i32
    return %arg0, %arg1 : i32, i32
  }
}

module attributes {stable_mosaic.version = 11 : i64} {
  func.func @_dense_add_ln_kernel(%arg0: i32, %arg1: i32, %arg2: memref<16x32xf32, #tpu.memory_space<vmem>>, %arg3: memref<32x32xbf16, #tpu.memory_space<vmem>>, %arg4: memref<1x32xf32, #tpu.memory_space<vmem>>, %arg5: memref<16x32xf32, #tpu.memory_space<vmem>>, %arg6: memref<1x32xf32, #tpu.memory_space<vmem>>, %arg7: memref<1x32xf32, #tpu.memory_space<vmem>>, %arg8: memref<16x32xf32, #tpu.memory_space<vmem>>, %arg9: memref<16x32xf32, #tpu.memory_space<vmem>>) attributes {dimension_semantics = [#tpu.dimension_semantics<parallel>, #tpu.dimension_semantics<arbitrary>], iteration_bounds = array<i64: 1, 1>, scalar_prefetch = 0 : i64, scratch_operands = 1 : i64, tpu.core_type = #tpu.core_type<tc>, window_params = [{transform_indices = @transform_0, window_bounds = array<i64: 16, 32>}, {transform_indices = @transform_1, window_bounds = array<i64: 32, 32>}, {pipeline_mode = #tpu.pipeline_mode<synchronous>, transform_indices = @transform_2, window_bounds = array<i64: 1, 32>}, {transform_indices = @transform_3, window_bounds = array<i64: 16, 32>}, {pipeline_mode = #tpu.pipeline_mode<synchronous>, transform_indices = @transform_4, window_bounds = array<i64: 1, 32>}, {pipeline_mode = #tpu.pipeline_mode<synchronous>, transform_indices = @transform_5, window_bounds = array<i64: 1, 32>}, {transform_indices = @transform_6, window_bounds = array<i64: 16, 32>}]} {
    %c0_i32 = arith.constant 0 : i32
    %0 = arith.cmpi eq, %arg1, %c0_i32 : i32
    %1 = arith.extui %0 : i1 to i32
    %c0_i32_0 = arith.constant 0 : i32
    %2 = arith.cmpi ne, %1, %c0_i32_0 : i32
    scf.if %2 {
      %cst_10 = arith.constant 0.000000e+00 : f32
      %13 = vector.broadcast %cst_10 : f32 to vector<16x32xf32>
      %c0_11 = arith.constant 0 : index
      %c0_12 = arith.constant 0 : index
      %14 = vector.load %arg9[%c0_11, %c0_12] : memref<16x32xf32, #tpu.memory_space<vmem>>, vector<16x32xf32>
      tpu.vector_store %arg9[%c0_11, %c0_12], %13 {strides = array<i32>} : memref<16x32xf32, #tpu.memory_space<vmem>>, vector<16x32xf32>,
    } else {
    }
    %c0 = arith.constant 0 : index
    %c0_1 = arith.constant 0 : index
    %3 = vector.load %arg9[%c0, %c0_1] : memref<16x32xf32, #tpu.memory_space<vmem>>, vector<16x32xf32>
    %c0_2 = arith.constant 0 : index
    %c0_3 = arith.constant 0 : index
    %4 = vector.load %arg2[%c0_2, %c0_3] : memref<16x32xf32, #tpu.memory_space<vmem>>, vector<16x32xf32>
    %5 = arith.truncf %4 : vector<16x32xf32> to vector<16x32xbf16>
    %c0_4 = arith.constant 0 : index
    %c0_5 = arith.constant 0 : index
    %6 = vector.load %arg3[%c0_4, %c0_5] : memref<32x32xbf16, #tpu.memory_space<vmem>>, vector<32x32xbf16>
    %cst = arith.constant dense<0.000000e+00> : vector<16x32xf32>
    %7 = tpu.matmul %5, %6, %cst {dimension_numbers = #tpu.dot_dimension_numbers<[1], [0], [0], [1], [0, 0, 1, 1], [], []>} : vector<16x32xbf16>, vector<32x32xbf16>, vector<16x32xf32> -> vector<16x32xf32>
    %8 = arith.addf %3, %7 : vector<16x32xf32>
    %c0_6 = arith.constant 0 : index
    %c0_7 = arith.constant 0 : index
    %9 = vector.load %arg9[%c0_6, %c0_7] : memref<16x32xf32, #tpu.memory_space<vmem>>, vector<16x32xf32>
    tpu.vector_store %arg9[%c0_6, %c0_7], %8 {strides = array<i32>} : memref<16x32xf32, #tpu.memory_space<vmem>>, vector<16x32xf32>,
    %c0_i32_8 = arith.constant 0 : i32
    %10 = arith.cmpi eq, %arg1, %c0_i32_8 : i32
    %11 = arith.extui %10 : i1 to i32
    %c0_i32_9 = arith.constant 0 : i32
    %12 = arith.cmpi ne, %11, %c0_i32_9 : i32
    scf.if %12 {
      %c0_10 = arith.constant 0 : index
      %c0_11 = arith.constant 0 : index
      %13 = vector.load %arg9[%c0_10, %c0_11] : memref<16x32xf32, #tpu.memory_space<vmem>>, vector<16x32xf32>
      %c0_12 = arith.constant 0 : index
      %c0_13 = arith.constant 0 : index
      %14 = vector.load %arg4[%c0_12, %c0_13] : memref<1x32xf32, #tpu.memory_space<vmem>>, vector<1x32xf32>
      %15 = vector.broadcast %14 : vector<1x32xf32> to vector<16x32xf32>
      %16 = arith.addf %13, %15 : vector<16x32xf32>
      %c0_14 = arith.constant 0 : index
      %c0_15 = arith.constant 0 : index
      %17 = vector.load %arg5[%c0_14, %c0_15] : memref<16x32xf32, #tpu.memory_space<vmem>>, vector<16x32xf32>
      %18 = arith.addf %16, %17 : vector<16x32xf32>
      %cst_16 = arith.constant dense<0.000000e+00> : vector<16xf32>
      %19 = vector.multi_reduction <add>, %18, %cst_16 [1] : vector<16x32xf32> to vector<16xf32>
      %20 = vector.shape_cast %19 : vector<16xf32> to vector<16x1xf32>
      %cst_17 = arith.constant 3.200000e+01 : f32
      %21 = vector.broadcast %cst_17 : f32 to vector<16x1xf32>
      %22 = arith.divf %20, %21 : vector<16x1xf32>
      %23 = vector.broadcast %22 : vector<16x1xf32> to vector<16x32xf32>
      %24 = arith.subf %18, %23 : vector<16x32xf32>
      %25 = arith.mulf %24, %24 : vector<16x32xf32>
      %cst_18 = arith.constant dense<0.000000e+00> : vector<16xf32>
      %26 = vector.multi_reduction <add>, %25, %cst_18 [1] : vector<16x32xf32> to vector<16xf32>
      %27 = vector.shape_cast %26 : vector<16xf32> to vector<16x1xf32>
      %cst_19 = arith.constant 3.200000e+01 : f32
      %28 = vector.broadcast %cst_19 : f32 to vector<16x1xf32>
      %29 = arith.divf %27, %28 : vector<16x1xf32>
      %30 = vector.broadcast %22 : vector<16x1xf32> to vector<16x32xf32>
      %31 = arith.subf %18, %30 : vector<16x32xf32>
      %cst_20 = arith.constant 9.99999996E-13 : f32
      %32 = vector.broadcast %cst_20 : f32 to vector<16x1xf32>
      %33 = arith.addf %29, %32 : vector<16x1xf32>
      %34 = math.rsqrt %33 : vector<16x1xf32>
      %35 = vector.broadcast %34 : vector<16x1xf32> to vector<16x32xf32>
      %36 = arith.mulf %31, %35 : vector<16x32xf32>
      %c0_21 = arith.constant 0 : index
      %c0_22 = arith.constant 0 : index
      %37 = vector.load %arg6[%c0_21, %c0_22] : memref<1x32xf32, #tpu.memory_space<vmem>>, vector<1x32xf32>
      %38 = vector.broadcast %37 : vector<1x32xf32> to vector<16x32xf32>
      %39 = arith.mulf %36, %38 : vector<16x32xf32>
      %c0_23 = arith.constant 0 : index
      %c0_24 = arith.constant 0 : index
      %40 = vector.load %arg7[%c0_23, %c0_24] : memref<1x32xf32, #tpu.memory_space<vmem>>, vector<1x32xf32>
      %41 = vector.broadcast %40 : vector<1x32xf32> to vector<16x32xf32>
      %42 = arith.addf %39, %41 : vector<16x32xf32>
      %c0_25 = arith.constant 0 : index
      %c0_26 = arith.constant 0 : index
      %43 = vector.load %arg8[%c0_25, %c0_26] : memref<16x32xf32, #tpu.memory_space<vmem>>, vector<16x32xf32>
      tpu.vector_store %arg8[%c0_25, %c0_26], %42 {strides = array<i32>} : memref<16x32xf32, #tpu.memory_space<vmem>>, vector<16x32xf32>,
    } else {
    }
    return
  }
  func.func @transform_0(%arg0: i32, %arg1: i32) -> (i32, i32) {
    %c0_i32 = arith.constant 0 : i32
    return %arg0, %arg1 : i32, i32
  }
  func.func @transform_1(%arg0: i32, %arg1: i32) -> (i32, i32) {
    %c0_i32 = arith.constant 0 : i32
    %c0_i32_0 = arith.constant 0 : i32
    return %arg1, %c0_i32 : i32, i32
  }
  func.func @transform_2(%arg0: i32, %arg1: i32) -> (i32, i32) {
    %c0_i32 = arith.constant 0 : i32
    %c0_i32_0 = arith.constant 0 : i32
    %c0_i32_1 = arith.constant 0 : i32
    return %c0_i32, %c0_i32_0 : i32, i32
  }
  func.func @transform_3(%arg0: i32, %arg1: i32) -> (i32, i32) {
    %c0_i32 = arith.constant 0 : i32
    %c0_i32_0 = arith.constant 0 : i32
    return %arg0, %c0_i32 : i32, i32
  }
  func.func @transform_4(%arg0: i32, %arg1: i32) -> (i32, i32) {
    %c0_i32 = arith.constant 0 : i32
    %c0_i32_0 = arith.constant 0 : i32
    %c0_i32_1 = arith.constant 0 : i32
    return %c0_i32, %c0_i32_0 : i32, i32
  }
  func.func @transform_5(%arg0: i32, %arg1: i32) -> (i32, i32) {
    %c0_i32 = arith.constant 0 : i32
    %c0_i32_0 = arith.constant 0 : i32
    %c0_i32_1 = arith.constant 0 : i32
    return %c0_i32, %c0_i32_0 : i32, i32
  }
  func.func @transform_6(%arg0: i32, %arg1: i32) -> (i32, i32) {
    %c0_i32 = arith.constant 0 : i32
    %c0_i32_0 = arith.constant 0 : i32
    return %arg0, %c0_i32 : i32, i32
  }
}

module attributes {stable_mosaic.version = 11 : i64} {
  func.func @_attention_kernel(%arg0: i32, %arg1: memref<1x1x8xf32, #tpu.memory_space<vmem>>, %arg2: memref<1x8x96xf32, #tpu.memory_space<vmem>>, %arg3: memref<1x8x32xf32, #tpu.memory_space<vmem>>) attributes {dimension_semantics = [#tpu.dimension_semantics<parallel>], iteration_bounds = array<i64: 2>, scalar_prefetch = 0 : i64, scratch_operands = 0 : i64, tpu.core_type = #tpu.core_type<tc>, window_params = [{transform_indices = @transform_0, window_bounds = array<i64: 1, 1, 8>}, {transform_indices = @transform_1, window_bounds = array<i64: 1, 8, 96>}, {transform_indices = @transform_2, window_bounds = array<i64: 1, 8, 32>}]} {
    %c0 = arith.constant 0 : index
    %c0_0 = arith.constant 0 : index
    %c0_1 = arith.constant 0 : index
    %0 = vector.load %arg2[%c0, %c0_0, %c0_1] : memref<1x8x96xf32, #tpu.memory_space<vmem>>, vector<1x8x96xf32>
    %1 = vector.shape_cast %0 : vector<1x8x96xf32> to vector<8x96xf32>
    %c0_2 = arith.constant 0 : index
    %c0_3 = arith.constant 0 : index
    %c0_4 = arith.constant 0 : index
    %2 = vector.load %arg1[%c0_2, %c0_3, %c0_4] : memref<1x1x8xf32, #tpu.memory_space<vmem>>, vector<1x1x8xf32>
    %3 = vector.shape_cast %2 : vector<1x1x8xf32> to vector<1x8xf32>
    %cst = arith.constant 5.000000e-01 : f32
    %4 = vector.broadcast %cst : f32 to vector<1x8xf32>
    %5 = arith.cmpf ogt, %3, %4 : vector<1x8xf32>
    %6 = vector.extract_strided_slice %1 {offsets = [0, 0], sizes = [8, 8], strides = [1, 1]} : vector<8x96xf32> to vector<8x8xf32>
    %7 = arith.truncf %6 : vector<8x8xf32> to vector<8x8xbf16>
    %8 = vector.extract_strided_slice %1 {offsets = [0, 32], sizes = [8, 8], strides = [1, 1]} : vector<8x96xf32> to vector<8x8xf32>
    %9 = arith.truncf %8 : vector<8x8xf32> to vector<8x8xbf16>
    %10 = vector.extract_strided_slice %1 {offsets = [0, 64], sizes = [8, 8], strides = [1, 1]} : vector<8x96xf32> to vector<8x8xf32>
    %11 = arith.truncf %10 : vector<8x8xf32> to vector<8x8xbf16>
    %cst_5 = arith.constant dense<0.000000e+00> : vector<8x8xf32>
    %12 = tpu.matmul %7, %9, %cst_5 {dimension_numbers = #tpu.dot_dimension_numbers<[1], [1], [0], [0], [0, 0, 1, 0], [], []>} : vector<8x8xbf16>, vector<8x8xbf16>, vector<8x8xf32> -> vector<8x8xf32>
    %cst_6 = arith.constant -3.40282347E+38 : f32
    %13 = vector.shape_cast %5 : vector<1x8xi1> to vector<1x8xi1>
    %14 = vector.broadcast %13 : vector<1x8xi1> to vector<8x8xi1>
    %15 = vector.broadcast %cst_6 : f32 to vector<8x8xf32>
    %16 = arith.select %14, %12, %15 : vector<8x8xi1>, vector<8x8xf32>
    %cst_7 = arith.constant dense<0xFF800000> : vector<8xf32>
    %17 = vector.multi_reduction <maximumf>, %16, %cst_7 [1] : vector<8x8xf32> to vector<8xf32>
    %18 = vector.shape_cast %17 : vector<8xf32> to vector<8x1xf32>
    %19 = vector.broadcast %18 : vector<8x1xf32> to vector<8x8xf32>
    %20 = arith.subf %16, %19 : vector<8x8xf32>
    %21 = math.exp %20 : vector<8x8xf32>
    %cst_8 = arith.constant dense<0.000000e+00> : vector<8xf32>
    %22 = vector.multi_reduction <add>, %21, %cst_8 [1] : vector<8x8xf32> to vector<8xf32>
    %23 = vector.shape_cast %22 : vector<8xf32> to vector<8x1xf32>
    %24 = tpu.reciprocal %23 {approx = true} : vector<8x1xf32> -> vector<8x1xf32>
    %25 = vector.broadcast %24 : vector<8x1xf32> to vector<8x8xf32>
    %26 = arith.mulf %21, %25 : vector<8x8xf32>
    %27 = arith.truncf %26 : vector<8x8xf32> to vector<8x8xbf16>
    %cst_9 = arith.constant dense<0.000000e+00> : vector<8x8xf32>
    %28 = tpu.matmul %27, %11, %cst_9 {dimension_numbers = #tpu.dot_dimension_numbers<[1], [0], [0], [1], [0, 0, 1, 1], [], []>} : vector<8x8xbf16>, vector<8x8xbf16>, vector<8x8xf32> -> vector<8x8xf32>
    %29 = vector.extract_strided_slice %1 {offsets = [0, 8], sizes = [8, 8], strides = [1, 1]} : vector<8x96xf32> to vector<8x8xf32>
    %30 = arith.truncf %29 : vector<8x8xf32> to vector<8x8xbf16>
    %31 = vector.extract_strided_slice %1 {offsets = [0, 40], sizes = [8, 8], strides = [1, 1]} : vector<8x96xf32> to vector<8x8xf32>
    %32 = arith.truncf %31 : vector<8x8xf32> to vector<8x8xbf16>
    %33 = vector.extract_strided_slice %1 {offsets = [0, 72], sizes = [8, 8], strides = [1, 1]} : vector<8x96xf32> to vector<8x8xf32>
    %34 = arith.truncf %33 : vector<8x8xf32> to vector<8x8xbf16>
    %cst_10 = arith.constant dense<0.000000e+00> : vector<8x8xf32>
    %35 = tpu.matmul %30, %32, %cst_10 {dimension_numbers = #tpu.dot_dimension_numbers<[1], [1], [0], [0], [0, 0, 1, 0], [], []>} : vector<8x8xbf16>, vector<8x8xbf16>, vector<8x8xf32> -> vector<8x8xf32>
    %cst_11 = arith.constant -3.40282347E+38 : f32
    %36 = vector.shape_cast %5 : vector<1x8xi1> to vector<1x8xi1>
    %37 = vector.broadcast %36 : vector<1x8xi1> to vector<8x8xi1>
    %38 = vector.broadcast %cst_11 : f32 to vector<8x8xf32>
    %39 = arith.select %37, %35, %38 : vector<8x8xi1>, vector<8x8xf32>
    %cst_12 = arith.constant dense<0xFF800000> : vector<8xf32>
    %40 = vector.multi_reduction <maximumf>, %39, %cst_12 [1] : vector<8x8xf32> to vector<8xf32>
    %41 = vector.shape_cast %40 : vector<8xf32> to vector<8x1xf32>
    %42 = vector.broadcast %41 : vector<8x1xf32> to vector<8x8xf32>
    %43 = arith.subf %39, %42 : vector<8x8xf32>
    %44 = math.exp %43 : vector<8x8xf32>
    %cst_13 = arith.constant dense<0.000000e+00> : vector<8xf32>
    %45 = vector.multi_reduction <add>, %44, %cst_13 [1] : vector<8x8xf32> to vector<8xf32>
    %46 = vector.shape_cast %45 : vector<8xf32> to vector<8x1xf32>
    %47 = tpu.reciprocal %46 {approx = true} : vector<8x1xf32> -> vector<8x1xf32>
    %48 = vector.broadcast %47 : vector<8x1xf32> to vector<8x8xf32>
    %49 = arith.mulf %44, %48 : vector<8x8xf32>
    %50 = arith.truncf %49 : vector<8x8xf32> to vector<8x8xbf16>
    %cst_14 = arith.constant dense<0.000000e+00> : vector<8x8xf32>
    %51 = tpu.matmul %50, %34, %cst_14 {dimension_numbers = #tpu.dot_dimension_numbers<[1], [0], [0], [1], [0, 0, 1, 1], [], []>} : vector<8x8xbf16>, vector<8x8xbf16>, vector<8x8xf32> -> vector<8x8xf32>
    %52 = vector.extract_strided_slice %1 {offsets = [0, 16], sizes = [8, 8], strides = [1, 1]} : vector<8x96xf32> to vector<8x8xf32>
    %53 = arith.truncf %52 : vector<8x8xf32> to vector<8x8xbf16>
    %54 = vector.extract_strided_slice %1 {offsets = [0, 48], sizes = [8, 8], strides = [1, 1]} : vector<8x96xf32> to vector<8x8xf32>
    %55 = arith.truncf %54 : vector<8x8xf32> to vector<8x8xbf16>
    %56 = vector.extract_strided_slice %1 {offsets = [0, 80], sizes = [8, 8], strides = [1, 1]} : vector<8x96xf32> to vector<8x8xf32>
    %57 = arith.truncf %56 : vector<8x8xf32> to vector<8x8xbf16>
    %cst_15 = arith.constant dense<0.000000e+00> : vector<8x8xf32>
    %58 = tpu.matmul %53, %55, %cst_15 {dimension_numbers = #tpu.dot_dimension_numbers<[1], [1], [0], [0], [0, 0, 1, 0], [], []>} : vector<8x8xbf16>, vector<8x8xbf16>, vector<8x8xf32> -> vector<8x8xf32>
    %cst_16 = arith.constant -3.40282347E+38 : f32
    %59 = vector.shape_cast %5 : vector<1x8xi1> to vector<1x8xi1>
    %60 = vector.broadcast %59 : vector<1x8xi1> to vector<8x8xi1>
    %61 = vector.broadcast %cst_16 : f32 to vector<8x8xf32>
    %62 = arith.select %60, %58, %61 : vector<8x8xi1>, vector<8x8xf32>
    %cst_17 = arith.constant dense<0xFF800000> : vector<8xf32>
    %63 = vector.multi_reduction <maximumf>, %62, %cst_17 [1] : vector<8x8xf32> to vector<8xf32>
    %64 = vector.shape_cast %63 : vector<8xf32> to vector<8x1xf32>
    %65 = vector.broadcast %64 : vector<8x1xf32> to vector<8x8xf32>
    %66 = arith.subf %62, %65 : vector<8x8xf32>
    %67 = math.exp %66 : vector<8x8xf32>
    %cst_18 = arith.constant dense<0.000000e+00> : vector<8xf32>
    %68 = vector.multi_reduction <add>, %67, %cst_18 [1] : vector<8x8xf32> to vector<8xf32>
    %69 = vector.shape_cast %68 : vector<8xf32> to vector<8x1xf32>
    %70 = tpu.reciprocal %69 {approx = true} : vector<8x1xf32> -> vector<8x1xf32>
    %71 = vector.broadcast %70 : vector<8x1xf32> to vector<8x8xf32>
    %72 = arith.mulf %67, %71 : vector<8x8xf32>
    %73 = arith.truncf %72 : vector<8x8xf32> to vector<8x8xbf16>
    %cst_19 = arith.constant dense<0.000000e+00> : vector<8x8xf32>
    %74 = tpu.matmul %73, %57, %cst_19 {dimension_numbers = #tpu.dot_dimension_numbers<[1], [0], [0], [1], [0, 0, 1, 1], [], []>} : vector<8x8xbf16>, vector<8x8xbf16>, vector<8x8xf32> -> vector<8x8xf32>
    %75 = vector.extract_strided_slice %1 {offsets = [0, 24], sizes = [8, 8], strides = [1, 1]} : vector<8x96xf32> to vector<8x8xf32>
    %76 = arith.truncf %75 : vector<8x8xf32> to vector<8x8xbf16>
    %77 = vector.extract_strided_slice %1 {offsets = [0, 56], sizes = [8, 8], strides = [1, 1]} : vector<8x96xf32> to vector<8x8xf32>
    %78 = arith.truncf %77 : vector<8x8xf32> to vector<8x8xbf16>
    %79 = vector.extract_strided_slice %1 {offsets = [0, 88], sizes = [8, 8], strides = [1, 1]} : vector<8x96xf32> to vector<8x8xf32>
    %80 = arith.truncf %79 : vector<8x8xf32> to vector<8x8xbf16>
    %cst_20 = arith.constant dense<0.000000e+00> : vector<8x8xf32>
    %81 = tpu.matmul %76, %78, %cst_20 {dimension_numbers = #tpu.dot_dimension_numbers<[1], [1], [0], [0], [0, 0, 1, 0], [], []>} : vector<8x8xbf16>, vector<8x8xbf16>, vector<8x8xf32> -> vector<8x8xf32>
    %cst_21 = arith.constant -3.40282347E+38 : f32
    %82 = vector.shape_cast %5 : vector<1x8xi1> to vector<1x8xi1>
    %83 = vector.broadcast %82 : vector<1x8xi1> to vector<8x8xi1>
    %84 = vector.broadcast %cst_21 : f32 to vector<8x8xf32>
    %85 = arith.select %83, %81, %84 : vector<8x8xi1>, vector<8x8xf32>
    %cst_22 = arith.constant dense<0xFF800000> : vector<8xf32>
    %86 = vector.multi_reduction <maximumf>, %85, %cst_22 [1] : vector<8x8xf32> to vector<8xf32>
    %87 = vector.shape_cast %86 : vector<8xf32> to vector<8x1xf32>
    %88 = vector.broadcast %87 : vector<8x1xf32> to vector<8x8xf32>
    %89 = arith.subf %85, %88 : vector<8x8xf32>
    %90 = math.exp %89 : vector<8x8xf32>
    %cst_23 = arith.constant dense<0.000000e+00> : vector<8xf32>
    %91 = vector.multi_reduction <add>, %90, %cst_23 [1] : vector<8x8xf32> to vector<8xf32>
    %92 = vector.shape_cast %91 : vector<8xf32> to vector<8x1xf32>
    %93 = tpu.reciprocal %92 {approx = true} : vector<8x1xf32> -> vector<8x1xf32>
    %94 = vector.broadcast %93 : vector<8x1xf32> to vector<8x8xf32>
    %95 = arith.mulf %90, %94 : vector<8x8xf32>
    %96 = arith.truncf %95 : vector<8x8xf32> to vector<8x8xbf16>
    %cst_24 = arith.constant dense<0.000000e+00> : vector<8x8xf32>
    %97 = tpu.matmul %96, %80, %cst_24 {dimension_numbers = #tpu.dot_dimension_numbers<[1], [0], [0], [1], [0, 0, 1, 1], [], []>} : vector<8x8xbf16>, vector<8x8xbf16>, vector<8x8xf32> -> vector<8x8xf32>
    %98 = tpu.concatenate %28, %51, %74, %97 in 1 : vector<8x8xf32>, vector<8x8xf32>, vector<8x8xf32>, vector<8x8xf32> -> vector<8x32xf32>
    %c0_25 = arith.constant 0 : index
    %c0_26 = arith.constant 0 : index
    %c0_27 = arith.constant 0 : index
    %99 = vector.load %arg3[%c0_25, %c0_26, %c0_27] : memref<1x8x32xf32, #tpu.memory_space<vmem>>, vector<1x8x32xf32>
    %100 = vector.shape_cast %99 : vector<1x8x32xf32> to vector<8x32xf32>
    %101 = vector.shape_cast %98 : vector<8x32xf32> to vector<1x8x32xf32>
    tpu.vector_store %arg3[%c0_25, %c0_26, %c0_27], %101 {strides = array<i32>} : memref<1x8x32xf32, #tpu.memory_space<vmem>>, vector<1x8x32xf32>,
    return
  }
  func.func @transform_0(%arg0: i32) -> (i32, i32, i32) {
    %c0_i32 = arith.constant 0 : i32
    %c0_i32_0 = arith.constant 0 : i32
    %c0_i32_1 = arith.constant 0 : i32
    return %arg0, %c0_i32, %c0_i32_0 : i32, i32, i32
  }
  func.func @transform_1(%arg0: i32) -> (i32, i32, i32) {
    %c0_i32 = arith.constant 0 : i32
    %c0_i32_0 = arith.constant 0 : i32
    %c0_i32_1 = arith.constant 0 : i32
    return %arg0, %c0_i32, %c0_i32_0 : i32, i32, i32
  }
  func.func @transform_2(%arg0: i32) -> (i32, i32, i32) {
    %c0_i32 = arith.constant 0 : i32
    %c0_i32_0 = arith.constant 0 : i32
    %c0_i32_1 = arith.constant 0 : i32
    return %arg0, %c0_i32, %c0_i32_0 : i32, i32, i32
  }
}

module attributes {stable_mosaic.version = 11 : i64} {
  func.func @_dense_add_ln_kernel(%arg0: i32, %arg1: i32, %arg2: memref<16x64xf32, #tpu.memory_space<vmem>>, %arg3: memref<64x32xbf16, #tpu.memory_space<vmem>>, %arg4: memref<1x32xf32, #tpu.memory_space<vmem>>, %arg5: memref<16x32xf32, #tpu.memory_space<vmem>>, %arg6: memref<1x32xf32, #tpu.memory_space<vmem>>, %arg7: memref<1x32xf32, #tpu.memory_space<vmem>>, %arg8: memref<16x32xf32, #tpu.memory_space<vmem>>, %arg9: memref<16x32xf32, #tpu.memory_space<vmem>>) attributes {dimension_semantics = [#tpu.dimension_semantics<parallel>, #tpu.dimension_semantics<arbitrary>], iteration_bounds = array<i64: 1, 1>, scalar_prefetch = 0 : i64, scratch_operands = 1 : i64, tpu.core_type = #tpu.core_type<tc>, window_params = [{transform_indices = @transform_0, window_bounds = array<i64: 16, 64>}, {transform_indices = @transform_1, window_bounds = array<i64: 64, 32>}, {pipeline_mode = #tpu.pipeline_mode<synchronous>, transform_indices = @transform_2, window_bounds = array<i64: 1, 32>}, {transform_indices = @transform_3, window_bounds = array<i64: 16, 32>}, {pipeline_mode = #tpu.pipeline_mode<synchronous>, transform_indices = @transform_4, window_bounds = array<i64: 1, 32>}, {pipeline_mode = #tpu.pipeline_mode<synchronous>, transform_indices = @transform_5, window_bounds = array<i64: 1, 32>}, {transform_indices = @transform_6, window_bounds = array<i64: 16, 32>}]} {
    %c0_i32 = arith.constant 0 : i32
    %0 = arith.cmpi eq, %arg1, %c0_i32 : i32
    %1 = arith.extui %0 : i1 to i32
    %c0_i32_0 = arith.constant 0 : i32
    %2 = arith.cmpi ne, %1, %c0_i32_0 : i32
    scf.if %2 {
      %cst_10 = arith.constant 0.000000e+00 : f32
      %13 = vector.broadcast %cst_10 : f32 to vector<16x32xf32>
      %c0_11 = arith.constant 0 : index
      %c0_12 = arith.constant 0 : index
      %14 = vector.load %arg9[%c0_11, %c0_12] : memref<16x32xf32, #tpu.memory_space<vmem>>, vector<16x32xf32>
      tpu.vector_store %arg9[%c0_11, %c0_12], %13 {strides = array<i32>} : memref<16x32xf32, #tpu.memory_space<vmem>>, vector<16x32xf32>,
    } else {
    }
    %c0 = arith.constant 0 : index
    %c0_1 = arith.constant 0 : index
    %3 = vector.load %arg9[%c0, %c0_1] : memref<16x32xf32, #tpu.memory_space<vmem>>, vector<16x32xf32>
    %c0_2 = arith.constant 0 : index
    %c0_3 = arith.constant 0 : index
    %4 = vector.load %arg2[%c0_2, %c0_3] : memref<16x64xf32, #tpu.memory_space<vmem>>, vector<16x64xf32>
    %5 = arith.truncf %4 : vector<16x64xf32> to vector<16x64xbf16>
    %c0_4 = arith.constant 0 : index
    %c0_5 = arith.constant 0 : index
    %6 = vector.load %arg3[%c0_4, %c0_5] : memref<64x32xbf16, #tpu.memory_space<vmem>>, vector<64x32xbf16>
    %cst = arith.constant dense<0.000000e+00> : vector<16x32xf32>
    %7 = tpu.matmul %5, %6, %cst {dimension_numbers = #tpu.dot_dimension_numbers<[1], [0], [0], [1], [0, 0, 1, 1], [], []>} : vector<16x64xbf16>, vector<64x32xbf16>, vector<16x32xf32> -> vector<16x32xf32>
    %8 = arith.addf %3, %7 : vector<16x32xf32>
    %c0_6 = arith.constant 0 : index
    %c0_7 = arith.constant 0 : index
    %9 = vector.load %arg9[%c0_6, %c0_7] : memref<16x32xf32, #tpu.memory_space<vmem>>, vector<16x32xf32>
    tpu.vector_store %arg9[%c0_6, %c0_7], %8 {strides = array<i32>} : memref<16x32xf32, #tpu.memory_space<vmem>>, vector<16x32xf32>,
    %c0_i32_8 = arith.constant 0 : i32
    %10 = arith.cmpi eq, %arg1, %c0_i32_8 : i32
    %11 = arith.extui %10 : i1 to i32
    %c0_i32_9 = arith.constant 0 : i32
    %12 = arith.cmpi ne, %11, %c0_i32_9 : i32
    scf.if %12 {
      %c0_10 = arith.constant 0 : index
      %c0_11 = arith.constant 0 : index
      %13 = vector.load %arg9[%c0_10, %c0_11] : memref<16x32xf32, #tpu.memory_space<vmem>>, vector<16x32xf32>
      %c0_12 = arith.constant 0 : index
      %c0_13 = arith.constant 0 : index
      %14 = vector.load %arg4[%c0_12, %c0_13] : memref<1x32xf32, #tpu.memory_space<vmem>>, vector<1x32xf32>
      %15 = vector.broadcast %14 : vector<1x32xf32> to vector<16x32xf32>
      %16 = arith.addf %13, %15 : vector<16x32xf32>
      %c0_14 = arith.constant 0 : index
      %c0_15 = arith.constant 0 : index
      %17 = vector.load %arg5[%c0_14, %c0_15] : memref<16x32xf32, #tpu.memory_space<vmem>>, vector<16x32xf32>
      %18 = arith.addf %16, %17 : vector<16x32xf32>
      %cst_16 = arith.constant dense<0.000000e+00> : vector<16xf32>
      %19 = vector.multi_reduction <add>, %18, %cst_16 [1] : vector<16x32xf32> to vector<16xf32>
      %20 = vector.shape_cast %19 : vector<16xf32> to vector<16x1xf32>
      %cst_17 = arith.constant 3.200000e+01 : f32
      %21 = vector.broadcast %cst_17 : f32 to vector<16x1xf32>
      %22 = arith.divf %20, %21 : vector<16x1xf32>
      %23 = vector.broadcast %22 : vector<16x1xf32> to vector<16x32xf32>
      %24 = arith.subf %18, %23 : vector<16x32xf32>
      %25 = arith.mulf %24, %24 : vector<16x32xf32>
      %cst_18 = arith.constant dense<0.000000e+00> : vector<16xf32>
      %26 = vector.multi_reduction <add>, %25, %cst_18 [1] : vector<16x32xf32> to vector<16xf32>
      %27 = vector.shape_cast %26 : vector<16xf32> to vector<16x1xf32>
      %cst_19 = arith.constant 3.200000e+01 : f32
      %28 = vector.broadcast %cst_19 : f32 to vector<16x1xf32>
      %29 = arith.divf %27, %28 : vector<16x1xf32>
      %30 = vector.broadcast %22 : vector<16x1xf32> to vector<16x32xf32>
      %31 = arith.subf %18, %30 : vector<16x32xf32>
      %cst_20 = arith.constant 9.99999996E-13 : f32
      %32 = vector.broadcast %cst_20 : f32 to vector<16x1xf32>
      %33 = arith.addf %29, %32 : vector<16x1xf32>
      %34 = math.rsqrt %33 : vector<16x1xf32>
      %35 = vector.broadcast %34 : vector<16x1xf32> to vector<16x32xf32>
      %36 = arith.mulf %31, %35 : vector<16x32xf32>
      %c0_21 = arith.constant 0 : index
      %c0_22 = arith.constant 0 : index
      %37 = vector.load %arg6[%c0_21, %c0_22] : memref<1x32xf32, #tpu.memory_space<vmem>>, vector<1x32xf32>
      %38 = vector.broadcast %37 : vector<1x32xf32> to vector<16x32xf32>
      %39 = arith.mulf %36, %38 : vector<16x32xf32>
      %c0_23 = arith.constant 0 : index
      %c0_24 = arith.constant 0 : index
      %40 = vector.load %arg7[%c0_23, %c0_24] : memref<1x32xf32, #tpu.memory_space<vmem>>, vector<1x32xf32>
      %41 = vector.broadcast %40 : vector<1x32xf32> to vector<16x32xf32>
      %42 = arith.addf %39, %41 : vector<16x32xf32>
      %c0_25 = arith.constant 0 : index
      %c0_26 = arith.constant 0 : index
      %43 = vector.load %arg8[%c0_25, %c0_26] : memref<16x32xf32, #tpu.memory_space<vmem>>, vector<16x32xf32>
      tpu.vector_store %arg8[%c0_25, %c0_26], %42 {strides = array<i32>} : memref<16x32xf32, #tpu.memory_space<vmem>>, vector<16x32xf32>,
    } else {
    }
    return
  }
  func.func @transform_0(%arg0: i32, %arg1: i32) -> (i32, i32) {
    %c0_i32 = arith.constant 0 : i32
    return %arg0, %arg1 : i32, i32
  }
  func.func @transform_1(%arg0: i32, %arg1: i32) -> (i32, i32) {
    %c0_i32 = arith.constant 0 : i32
    %c0_i32_0 = arith.constant 0 : i32
    return %arg1, %c0_i32 : i32, i32
  }
  func.func @transform_2(%arg0: i32, %arg1: i32) -> (i32, i32) {
    %c0_i32 = arith.constant 0 : i32
    %c0_i32_0 = arith.constant 0 : i32
    %c0_i32_1 = arith.constant 0 : i32
    return %c0_i32, %c0_i32_0 : i32, i32
  }
  func.func @transform_3(%arg0: i32, %arg1: i32) -> (i32, i32) {
    %c0_i32 = arith.constant 0 : i32
    %c0_i32_0 = arith.constant 0 : i32
    return %arg0, %c0_i32 : i32, i32
  }
  func.func @transform_4(%arg0: i32, %arg1: i32) -> (i32, i32) {
    %c0_i32 = arith.constant 0 : i32
    %c0_i32_0 = arith.constant 0 : i32
    %c0_i32_1 = arith.constant 0 : i32
    return %c0_i32, %c0_i32_0 : i32, i32
  }
  func.func @transform_5(%arg0: i32, %arg1: i32) -> (i32, i32) {
    %c0_i32 = arith.constant 0 : i32
    %c0_i32_0 = arith.constant 0 : i32
    %c0_i32_1 = arith.constant 0 : i32
    return %c0_i32, %c0_i32_0 : i32, i32
  }
  func.func @transform_6(%arg0: i32, %arg1: i32) -> (i32, i32) {
    %c0_i32 = arith.constant 0 : i32
    %c0_i32_0 = arith.constant 0 : i32
    return %arg0, %c0_i32 : i32, i32
  }
}

module attributes {stable_mosaic.version = 11 : i64} {
  func.func @_dense_kernel(%arg0: i32, %arg1: i32, %arg2: i32, %arg3: memref<16x32xf32, #tpu.memory_space<vmem>>, %arg4: memref<32x64xbf16, #tpu.memory_space<vmem>>, %arg5: memref<1x64xf32, #tpu.memory_space<vmem>>, %arg6: memref<16x64xf32, #tpu.memory_space<vmem>>, %arg7: memref<16x64xf32, #tpu.memory_space<vmem>>) attributes {dimension_semantics = [#tpu.dimension_semantics<parallel>, #tpu.dimension_semantics<parallel>, #tpu.dimension_semantics<arbitrary>], iteration_bounds = array<i64: 1, 1, 1>, scalar_prefetch = 0 : i64, scratch_operands = 1 : i64, tpu.core_type = #tpu.core_type<tc>, window_params = [{transform_indices = @transform_0, window_bounds = array<i64: 16, 32>}, {transform_indices = @transform_1, window_bounds = array<i64: 32, 64>}, {transform_indices = @transform_2, window_bounds = array<i64: 1, 64>}, {transform_indices = @transform_3, window_bounds = array<i64: 16, 64>}]} {
    %c0_i32 = arith.constant 0 : i32
    %0 = arith.cmpi eq, %arg2, %c0_i32 : i32
    %1 = arith.extui %0 : i1 to i32
    %c0_i32_0 = arith.constant 0 : i32
    %2 = arith.cmpi ne, %1, %c0_i32_0 : i32
    scf.if %2 {
      %cst_10 = arith.constant 0.000000e+00 : f32
      %13 = vector.broadcast %cst_10 : f32 to vector<16x64xf32>
      %c0_11 = arith.constant 0 : index
      %c0_12 = arith.constant 0 : index
      %14 = vector.load %arg7[%c0_11, %c0_12] : memref<16x64xf32, #tpu.memory_space<vmem>>, vector<16x64xf32>
      tpu.vector_store %arg7[%c0_11, %c0_12], %13 {strides = array<i32>} : memref<16x64xf32, #tpu.memory_space<vmem>>, vector<16x64xf32>,
    } else {
    }
    %c0 = arith.constant 0 : index
    %c0_1 = arith.constant 0 : index
    %3 = vector.load %arg7[%c0, %c0_1] : memref<16x64xf32, #tpu.memory_space<vmem>>, vector<16x64xf32>
    %c0_2 = arith.constant 0 : index
    %c0_3 = arith.constant 0 : index
    %4 = vector.load %arg3[%c0_2, %c0_3] : memref<16x32xf32, #tpu.memory_space<vmem>>, vector<16x32xf32>
    %5 = arith.truncf %4 : vector<16x32xf32> to vector<16x32xbf16>
    %c0_4 = arith.constant 0 : index
    %c0_5 = arith.constant 0 : index
    %6 = vector.load %arg4[%c0_4, %c0_5] : memref<32x64xbf16, #tpu.memory_space<vmem>>, vector<32x64xbf16>
    %cst = arith.constant dense<0.000000e+00> : vector<16x64xf32>
    %7 = tpu.matmul %5, %6, %cst {dimension_numbers = #tpu.dot_dimension_numbers<[1], [0], [0], [1], [0, 0, 1, 1], [], []>} : vector<16x32xbf16>, vector<32x64xbf16>, vector<16x64xf32> -> vector<16x64xf32>
    %8 = arith.addf %3, %7 : vector<16x64xf32>
    %c0_6 = arith.constant 0 : index
    %c0_7 = arith.constant 0 : index
    %9 = vector.load %arg7[%c0_6, %c0_7] : memref<16x64xf32, #tpu.memory_space<vmem>>, vector<16x64xf32>
    tpu.vector_store %arg7[%c0_6, %c0_7], %8 {strides = array<i32>} : memref<16x64xf32, #tpu.memory_space<vmem>>, vector<16x64xf32>,
    %c0_i32_8 = arith.constant 0 : i32
    %10 = arith.cmpi eq, %arg2, %c0_i32_8 : i32
    %11 = arith.extui %10 : i1 to i32
    %c0_i32_9 = arith.constant 0 : i32
    %12 = arith.cmpi ne, %11, %c0_i32_9 : i32
    scf.if %12 {
      %c0_10 = arith.constant 0 : index
      %c0_11 = arith.constant 0 : index
      %13 = vector.load %arg7[%c0_10, %c0_11] : memref<16x64xf32, #tpu.memory_space<vmem>>, vector<16x64xf32>
      %c0_12 = arith.constant 0 : index
      %c0_13 = arith.constant 0 : index
      %14 = vector.load %arg5[%c0_12, %c0_13] : memref<1x64xf32, #tpu.memory_space<vmem>>, vector<1x64xf32>
      %15 = vector.broadcast %14 : vector<1x64xf32> to vector<16x64xf32>
      %16 = arith.addf %13, %15 : vector<16x64xf32>
      %cst_14 = arith.constant 5.000000e-01 : f32
      %17 = vector.broadcast %cst_14 : f32 to vector<16x64xf32>
      %18 = arith.mulf %17, %16 : vector<16x64xf32>
      %cst_15 = arith.constant 4.471500e-02 : f32
      %19 = vector.broadcast %cst_15 : f32 to vector<16x64xf32>
      %20 = arith.mulf %19, %16 : vector<16x64xf32>
      %21 = arith.mulf %20, %16 : vector<16x64xf32>
      %22 = arith.mulf %21, %16 : vector<16x64xf32>
      %23 = arith.addf %16, %22 : vector<16x64xf32>
      %cst_16 = arith.constant 0.797884583 : f32
      %24 = vector.broadcast %cst_16 : f32 to vector<16x64xf32>
      %25 = arith.mulf %24, %23 : vector<16x64xf32>
      %26 = math.tanh %25 : vector<16x64xf32>
      %cst_17 = arith.constant 1.000000e+00 : f32
      %27 = vector.broadcast %cst_17 : f32 to vector<16x64xf32>
      %28 = arith.addf %27, %26 : vector<16x64xf32>
      %29 = arith.mulf %18, %28 : vector<16x64xf32>
      %c0_18 = arith.constant 0 : index
      %c0_19 = arith.constant 0 : index
      %30 = vector.load %arg6[%c0_18, %c0_19] : memref<16x64xf32, #tpu.memory_space<vmem>>, vector<16x64xf32>
      tpu.vector_store %arg6[%c0_18, %c0_19], %29 {strides = array<i32>} : memref<16x64xf32, #tpu.memory_space<vmem>>, vector<16x64xf32>,
    } else {
    }
    return
  }
  func.func @transform_0(%arg0: i32, %arg1: i32, %arg2: i32) -> (i32, i32) {
    %c0_i32 = arith.constant 0 : i32
    return %arg0, %arg2 : i32, i32
  }
  func.func @transform_1(%arg0: i32, %arg1: i32, %arg2: i32) -> (i32, i32) {
    %c0_i32 = arith.constant 0 : i32
    return %arg2, %arg1 : i32, i32
  }
  func.func @transform_2(%arg0: i32, %arg1: i32, %arg2: i32) -> (i32, i32) {
    %c0_i32 = arith.constant 0 : i32
    %c0_i32_0 = arith.constant 0 : i32
    return %c0_i32, %arg1 : i32, i32
  }
  func.func @transform_3(%arg0: i32, %arg1: i32, %arg2: i32) -> (i32, i32) {
    %c0_i32 = arith.constant 0 : i32
    return %arg0, %arg1 : i32, i32
  }
}

</mosaic_0001>

<bundles_post_ra>
// kernel: text_encoder_forward.12
= control target key start
LH: loop header
LB: loop body
LE: loop exit
PB: predicated region body
PF: predicated region fallthrough
CT: control target
= control target key end

     0   :  { %vm19_vm0 = vcmask 785408   ;;  %v132_v0 = vmov 0.0   ;;  %vm133_vm1 = vmmov 0   ;;  %vm43_vm2 = vcmask 261120   ;;  %s181_s1 = inlined_call_operand.vmem [shape: bf16[32,96], index: 1, kind: input, shape index: {}]   ;;  %s182_s0 = inlined_call_operand.vmem [shape: f32[16,32], index: 0, kind: input, shape index: {}]   ;;  %s183_s2 = inlined_call_operand.vmem [shape: f32[1,96], index: 2, kind: input, shape index: {}]   ;;  %s184_s3 = inlined_call_operand.vmem [shape: f32[16,96], index: 3, kind: output, shape index: {}]  }
   0x1   :  { %120 = vmatprep.subr.bf16.mxu0 %v132_v0  ;;  %v130_v1 = vld [vmem:[%s181_s1 + $0x8] sm:$0xff]   ;;  %124 = vmatprep.mubr.msk.bf16.mxu0 %vm133_vm1, %v132_v0  ;;  %20 = vst.msk [vmem:[#allocation2] sm:$0xff] %vm19_vm0, %v132_v0  ;;  %21 = vst.msk [vmem:[#allocation2 + $0x8] sm:$0xff] %vm19_vm0, %v132_v0  ;;  %v131_v2 = vld [vmem:[%s181_s1] sm:$0xff]  }
   0x2   :  { %121 = vmatpush3.bf16.msra.mxu0 %v130_v1  ;;  %v24_v3 = vld [vmem:[%s182_s0] sm:$0xff]  ;;  %v25_v4 = vld [vmem:[%s182_s0 + $0x8] sm:$0xff] }
   0x3   :  { %122 = vmatprep.subr.bf16.mxu0 %v132_v0  ;;  %v26_v5 = vpack.c.bf16 %v25_v4, %v24_v3  ;;  %v116_v14 = vld [vmem:[%s183_s2] ss:$0 sm:$0xff] }
   0x6   :  { %123 = vmatpush3.bf16.msra.mxu0 %v131_v2 }
   0x8   :  { %v22_v6 = vld [vmem:[#allocation2] sm:$0xff]  ;;  %v23_v10 = vld [vmem:[#allocation2 + $0x8] sm:$0xff] }
   0x9   :  { %125 = vmatmul.mubr.msk.bf16.vlgmr.msra.gmra.mxu0 %vm43_vm2, %v26_v5 }
  0xc9   :  { %v81_v7 = vpop.f32.mrf.mxu0 }
  0xca   :  { %v88_v8 = vadd.f32 %v81_v7, %v22_v6 }
  0xcb   :  { %v126_v9 = vpop.f32.mrf.mxu0 }
  0xcc   :  { %91 = vst.msk [vmem:[#allocation2] sm:$0xff] %vm19_vm0, %v88_v8 }
  0xcd   :  { %v84_v11 = vpop.f32.mrf.mxu0 }
  0xce   :  { %v89_v12 = vadd.f32 %v84_v11, %v23_v10 }
  0xcf   :  { %v127_v13 = vpop.f32.mrf.mxu0 }
  0xd0   :  { %92 = vst.msk [vmem:[#allocation2 + $0x8] sm:$0xff] %vm19_vm0, %v89_v12 }
  0xd3   :  { %v96_v15 = vld [vmem:[#allocation2] sm:$0xff] }
  0xd4   :  { %v105_v16 = vadd.f32 %v116_v14, %v96_v15 }
  0xd6   :  { %107 = vst.msk [vmem:[%s184_s3] sm:$0xff] %vm19_vm0, %v105_v16 }
  0xd7   :  { %v97_v17 = vld [vmem:[#allocation2 + $0x8] sm:$0xff] }
  0xd8   :  { %v106_v18 = vadd.f32 %v116_v14, %v97_v17 }
  0xda   :  { %108 = vst.msk [vmem:[%s184_s3 + $0x8] sm:$0xff] %vm19_vm0, %v106_v18 }

// kernel: text_encoder_forward.11
= control target key start
LH: loop header
LB: loop body
LE: loop exit
PB: predicated region body
PF: predicated region fallthrough
CT: control target
= control target key end

     0   :  { %vm16_vm0 = vcmask 261120   ;;  %s118_s0 = inlined_call_operand.vmem [shape: f32[16,32], index: 0, kind: input, shape index: {}]   ;;  %s119_s1 = inlined_call_operand.vmem [shape: f32[1,32], index: 1, kind: input, shape index: {}]   ;;  %s120_s2 = inlined_call_operand.vmem [shape: f32[1,32], index: 2, kind: input, shape index: {}]   ;;  %s121_s3 = inlined_call_operand.vmem [shape: f32[16,32], index: 3, kind: output, shape index: {}]  }
   0x1   :  { %v14_v0 = vld [vmem:[%s118_s0] sm:$0xff]  ;;  %v15_v1 = vld [vmem:[%s118_s0 + $0x8] sm:$0xff] }
   0x2   :  { %v17_v2 = vsel %vm16_vm0, %v14_v0, 0.0  ;;  %v20_v3 = vsel %vm16_vm0, %v15_v1, 0.0  ;;  %v68_v21 = vld [vmem:[%s119_s1] ss:$0 sm:$0xff] }
   0x3   :  { %18 = vadd.xlane.f32.xlu0 %v17_v2  ;;  %v69_v23 = vld [vmem:[%s120_s2] ss:$0 sm:$0xff] }
   0x7   :  { %21 = vadd.xlane.f32.xlu0 %v20_v3 }
  0x8c   :  { %v19_v4 = vpop.xlane.xlu0 %18 }
  0x8d   :  { %v24_v5 = vmul.f32 0.03125, %v19_v4 }
  0x8f   :  { %v26_v6 = vsub.f32 %v14_v0, %v24_v5 }
  0x90   :  { %v22_v7 = vpop.xlane.xlu0 %21 }
  0x91   :  { %v25_v8 = vmul.f32 0.03125, %v22_v7  ;;  %v28_v9 = vmul.f32 %v26_v6, %v26_v6 }
  0x93   :  { %v27_v10 = vsub.f32 %v15_v1, %v25_v8  ;;  %v30_v11 = vsel %vm16_vm0, %v28_v9, 0.0 }
  0x94   :  { %31 = vadd.xlane.f32.xlu1 %v30_v11 }
  0x95   :  { %v29_v12 = vmul.f32 %v27_v10, %v27_v10 }
  0x97   :  { %v33_v13 = vsel %vm16_vm0, %v29_v12, 0.0 }
  0x98   :  { %34 = vadd.xlane.f32.xlu1 %v33_v13 }
 0x11d   :  { %v32_v14 = vpop.xlane.xlu1 %31 }
 0x11e   :  { %v36_v15 = vmul.f32 0.03125, %v32_v14 }
 0x120   :  { %v38_v16 = vadd.f32 1e-12, %v36_v15 }
 0x121   :  { %v35_v17 = vpop.xlane.xlu1 %34 }
 0x122   :  { %70 = vrsqrt.f32 %v38_v16  ;;  %v37_v18 = vmul.f32 0.03125, %v35_v17 }
 0x124   :  { %v39_v19 = vadd.f32 1e-12, %v37_v18 }
 0x126   :  { %72 = vrsqrt.f32 %v39_v19 }
 0x12f   :  { %v71_v20 = vpop.eup %70 }
 0x130   :  { %v42_v22 = vmul.f32 %v71_v20, %v26_v6 }
 0x132   :  { %v51_v24 = vmul.f32 %v68_v21, %v42_v22 }
 0x133   :  { %v73_v25 = vpop.eup %72 }
 0x134   :  { %v60_v26 = vadd.f32 %v69_v23, %v51_v24  ;;  %v43_v27 = vmul.f32 %v73_v25, %v27_v10 }
 0x136   :  { %62 = vst.msk [vmem:[%s121_s3] sm:$0xff] %vm16_vm0, %v60_v26  ;;  %v52_v28 = vmul.f32 %v68_v21, %v43_v27 }
 0x138   :  { %v61_v29 = vadd.f32 %v69_v23, %v52_v28 }
 0x13a   :  { %63 = vst.msk [vmem:[%s121_s3 + $0x8] sm:$0xff] %vm16_vm0, %v61_v29 }

// kernel: text_encoder_forward.14
= control target key start
LH: loop header
LB: loop body
LE: loop exit
PB: predicated region body
PF: predicated region fallthrough
CT: control target
= control target key end

     0   :  { %vm28_vm0 = vcmask 261120   ;;  %v195_v0 = vmov 0.0   ;;  %vm196_vm1 = vmmov 0   ;;  %s276_s1 = inlined_call_operand.vmem [shape: bf16[32,32], index: 1, kind: input, shape index: {}]   ;;  %s277_s0 = inlined_call_operand.vmem [shape: f32[16,32], index: 0, kind: input, shape index: {}]   ;;  %s278_s2 = inlined_call_operand.vmem [shape: f32[1,32], index: 2, kind: input, shape index: {}]   ;;  %s279_s3 = inlined_call_operand.vmem [shape: f32[16,32], index: 3, kind: input, shape index: {}]   ;;  %s280_s4 = inlined_call_operand.vmem [shape: f32[1,32], index: 4, kind: input, shape index: {}]   ;;  %s281_s5 = inlined_call_operand.vmem [shape: f32[1,32], index: 5, kind: input, shape index: {}]   ;;  %s282_s6 = inlined_call_operand.vmem [shape: f32[16,32], index: 6, kind: output, shape index: {}]  }
   0x1   :  { %179 = vmatprep.subr.bf16.mxu0 %v195_v0  ;;  %v189_v1 = vld [vmem:[%s276_s1 + $0x8] sm:$0xff]   ;;  %183 = vmatprep.mubr.msk.bf16.mxu0 %vm196_vm1, %v195_v0  ;;  %29 = vst.msk [vmem:[#allocation2] sm:$0xff] %vm28_vm0, %v195_v0  ;;  %30 = vst.msk [vmem:[#allocation2 + $0x8] sm:$0xff] %vm28_vm0, %v195_v0  ;;  %v190_v2 = vld [vmem:[%s276_s1] sm:$0xff]  }
   0x2   :  { %180 = vmatpush3.bf16.msra.mxu0 %v189_v1  ;;  %v33_v3 = vld [vmem:[%s277_s0] sm:$0xff]  ;;  %v34_v4 = vld [vmem:[%s277_s0 + $0x8] sm:$0xff] }
   0x3   :  { %181 = vmatprep.subr.bf16.mxu0 %v195_v0  ;;  %v35_v5 = vpack.c.bf16 %v34_v4, %v33_v3  ;;  %v173_v14 = vld [vmem:[%s278_s2] ss:$0 sm:$0xff]  ;;  %v116_v20 = vld [vmem:[%s279_s3 + $0x8] sm:$0xff] }
   0x4   :  { %v115_v16 = vld [vmem:[%s279_s3] sm:$0xff] }
   0x5   :  { %v174_v42 = vld [vmem:[%s280_s4] ss:$0 sm:$0xff] }
   0x6   :  { %182 = vmatpush3.bf16.msra.mxu0 %v190_v2  ;;  %v175_v44 = vld [vmem:[%s281_s5] ss:$0 sm:$0xff] }
   0x8   :  { %v31_v6 = vld [vmem:[#allocation2] sm:$0xff]  ;;  %v32_v10 = vld [vmem:[#allocation2 + $0x8] sm:$0xff] }
   0x9   :  { %184 = vmatmul.mubr.msk.bf16.vlgmr.msra.gmra.mxu0 %vm28_vm0, %v35_v5 }
  0xc9   :  { %v90_v7 = vpop.f32.mrf.mxu0 }
  0xca   :  { %v97_v8 = vadd.f32 %v90_v7, %v31_v6 }
  0xcb   :  { %v185_v9 = vpop.f32.mrf.mxu0 }
  0xcc   :  { %99 = vst.msk [vmem:[#allocation2] sm:$0xff] %vm28_vm0, %v97_v8 }
  0xcd   :  { %v93_v11 = vpop.f32.mrf.mxu0 }
  0xce   :  { %v98_v12 = vadd.f32 %v93_v11, %v32_v10 }
  0xcf   :  { %v186_v13 = vpop.f32.mrf.mxu0 }
  0xd0   :  { %100 = vst.msk [vmem:[#allocation2 + $0x8] sm:$0xff] %vm28_vm0, %v98_v12 }
  0xd3   :  { %v104_v15 = vld [vmem:[#allocation2] sm:$0xff] }
  0xd4   :  { %v113_v17 = vadd.f32 %v173_v14, %v104_v15 }
  0xd6   :  { %v117_v18 = vadd.f32 %v115_v16, %v113_v17 }
  0xd7   :  { %v105_v19 = vld [vmem:[#allocation2 + $0x8] sm:$0xff] }
  0xd8   :  { %v119_v21 = vsel %vm28_vm0, %v117_v18, 0.0  ;;  %v114_v22 = vadd.f32 %v173_v14, %v105_v19 }
  0xd9   :  { %120 = vadd.xlane.f32.xlu0 %v119_v21 }
  0xda   :  { %v118_v23 = vadd.f32 %v116_v20, %v114_v22 }
  0xdc   :  { %v122_v24 = vsel %vm28_vm0, %v118_v23, 0.0 }
  0xdd   :  { %123 = vadd.xlane.f32.xlu0 %v122_v24 }
 0x162   :  { %v121_v25 = vpop.xlane.xlu0 %120 }
 0x163   :  { %v126_v26 = vmul.f32 0.03125, %v121_v25 }
 0x165   :  { %v128_v27 = vsub.f32 %v117_v18, %v126_v26 }
 0x166   :  { %v124_v28 = vpop.xlane.xlu0 %123 }
 0x167   :  { %v127_v29 = vmul.f32 0.03125, %v124_v28  ;;  %v130_v30 = vmul.f32 %v128_v27, %v128_v27 }
 0x169   :  { %v129_v31 = vsub.f32 %v118_v23, %v127_v29  ;;  %v132_v32 = vsel %vm28_vm0, %v130_v30, 0.0 }
 0x16a   :  { %133 = vadd.xlane.f32.xlu1 %v132_v32 }
 0x16b   :  { %v131_v33 = vmul.f32 %v129_v31, %v129_v31 }
 0x16d   :  { %v135_v34 = vsel %vm28_vm0, %v131_v33, 0.0 }
 0x16e   :  { %136 = vadd.xlane.f32.xlu1 %v135_v34 }
 0x1f3   :  { %v134_v35 = vpop.xlane.xlu1 %133 }
 0x1f4   :  { %v138_v36 = vmul.f32 0.03125, %v134_v35 }
 0x1f6   :  { %v140_v37 = vadd.f32 1e-12, %v138_v36 }
 0x1f7   :  { %v137_v38 = vpop.xlane.xlu1 %136 }
 0x1f8   :  { %191 = vrsqrt.f32 %v140_v37  ;;  %v139_v39 = vmul.f32 0.03125, %v137_v38 }
 0x1fa   :  { %v141_v40 = vadd.f32 1e-12, %v139_v39 }
 0x1fc   :  { %193 = vrsqrt.f32 %v141_v40 }
 0x205   :  { %v192_v41 = vpop.eup %191 }
 0x206   :  { %v144_v43 = vmul.f32 %v192_v41, %v128_v27 }
 0x208   :  { %v153_v45 = vmul.f32 %v174_v42, %v144_v43 }
 0x209   :  { %v194_v46 = vpop.eup %193 }
 0x20a   :  { %v162_v47 = vadd.f32 %v175_v44, %v153_v45  ;;  %v145_v48 = vmul.f32 %v194_v46, %v129_v31 }
 0x20c   :  { %164 = vst.msk [vmem:[%s282_s6] sm:$0xff] %vm28_vm0, %v162_v47  ;;  %v154_v49 = vmul.f32 %v174_v42, %v145_v48 }
 0x20e   :  { %v163_v50 = vadd.f32 %v175_v44, %v154_v49 }
 0x210   :  { %165 = vst.msk [vmem:[%s282_s6 + $0x8] sm:$0xff] %vm28_vm0, %v163_v50 }

// kernel: text_encoder_forward.13
= control target key start
LH: loop header
LB: loop body
LE: loop exit
PB: predicated region body
PF: predicated region fallthrough
CT: control target
= control target key end

     0   :  { %s852_s9 = smov 0   ;;  %s957_s0 = inlined_call_operand.vmem [shape: f32[2,1,8], index: 0, kind: input, shape index: {}]   ;;  %s958_s1 = inlined_call_operand.vmem [shape: f32[2,8,96], index: 1, kind: input, shape index: {}]   ;;  %s959_s2 = inlined_call_operand.vmem [shape: f32[2,8,32], index: 2, kind: output, shape index: {}]  }
   0x1 LB: > { %s690_s10 = sadd.s32 4294967295, %s818_s9   ;;  %p694_p0 = scmp.ge.s32.totalorder %s818_s9, 1  ;;  %s818_s9 = sphi %s852_s9, %s12_s9  }
   0x2   : > { %p119_p1 = scmp.lt.s32.totalorder %s818_s9, 3 }
   0x4   : > { %p120_p2 = pnand %p694_p0, %p119_p1 }
   0x5   : > { %p142_p3 = scmp.lt.s32.totalorder (!%p120_p2), %s690_s10, 1  ;;  %s822_s15 = smov (!%p120_p2), 96  }
   0x6   : > { %123 = sbr.rel (%p120_p2) target bundleno = 1535 (0x5ff), region = 28  ;;  %s823_s16 = smov (!%p120_p2), 64  }
   0x7   : > { %s824_s17 = smov (!%p120_p2), 88   ;;  %s826_s21 = smov (!%p120_p2), 72  }
   0x8   : > { %s827_s22 = smov (!%p120_p2), 120   ;;  %s828_s23 = smov (!%p120_p2), 80  }
   0x9   : > { %s829_s24 = smov (!%p120_p2), 112   ;;  %s830_s25 = smov (!%p120_p2), 104  }
   0xa   : > { %s831_s26 = smov (!%p120_p2), 56   ;;  %s832_s27 = smov (!%p120_p2), 48  }
   0xb   : > { %v820_v0 = vmov 0.0   ;;  %vm821_vm0 = vmmov 0   ;;  %s961_s10 = smov (!%p142_p3, %s690_s10), 1  ;;  %vm161_vm1 = vcmask 64512   ;;  %v209_v5 = vlaneseq  ;;  %s833_s28 = smov 40  }
   0xc   : > { %723 = vmatprep.subr.bf16.mxu0 %v820_v0  ;;  %725 = vmatprep.mubr.msk.bf16.mxu0 %vm821_vm0, %v820_v0  ;;  %s695_s11 = sshll.u32 %s961_s10, 3  ;;  %s144_s20 = scalar_lea.vmem %s957_s0, %s961_s10  ;;  %v825_v9 = vmov 0   ;;  %vm232_vm4 = vcmask 1043456   ;;  %vm622_vm5 = vcmask 130048   ;;  %vm624_vm6 = vcmask 195584  }
   0xd   : > { %729 = vmatprep.subr.bf16.mxu1 %v820_v0  ;;  %731 = vmatprep.mubr.msk.bf16.mxu1 %vm821_vm0, %v820_v0  ;;  %s148_s14 = scalar_lea.vmem %s958_s1, %s695_s11  ;;  %v155_v6 = vld [vmem:[%s144_s20] sm:$0x1]  ;;  %v210_v7 = vshrl.u32 %v209_v5, 7  ;;  %s834_s29 = smov 8   ;;  %vm626_vm7 = vcmask 261120  }
   0xe   : > { %v154_v1 = vld [vmem:[%s148_s14] sm:$0xff]  ;;  %vm156_vm2 = vcmp.gt.f32.partialorder %v155_v6, 0.5  ;;  %s835_s30 = smov 16   ;;  %s836_s3 = smov 24  }
   0xf   : > { %v874_v2 = vpack.c.bf16 %v154_v1, %v154_v1  ;;  %v211_v8 = vsub.s32 0, %v210_v7  ;;  %v208_v10 = vsel %vm156_vm2, 1, %v825_v9  ;;  %s152_s6 = scalar_lea.vmem %s959_s2, %s695_s11 }
  0x11   : > { %159 = vrot.lane.b32.xlu0 %v874_v2, %s822_s15  ;;  %227 = vrot.lane.b32.xlu1 %v874_v2, %s823_s16  ;;  %v889_v11 = vrot.slane %v208_v10, %v211_v8 }
  0x13   : > { %vm213_vm3 = vcmp.eq.s32.totalorder %v889_v11, 1 }
  0x15   : > { %278 = vrot.lane.b32.xlu1 %v874_v2, %s824_s17 }
  0x83   : > { %v160_v3 = vpop.permute.xlu0 %159  ;;  %v228_v18 = vpop.permute.xlu1 %227 }
  0x84   : > { %v166_v4 = vsel %vm161_vm1, %v160_v3, 0  ;;  %v234_v19 = vsel %vm232_vm4, %v228_v18, 0 }
  0x85   : > { %724 = vmatpush3.bf16.xpose.msra.mxu0 %v166_v4  ;;  %730 = vmatpush3.bf16.msra.mxu1 %v234_v19 }
  0x86   : > { %741 = vmatprep.subr.bf16.mxu0 %v820_v0  ;;  %735 = vmatprep.subr.bf16.mxu1 %v820_v0 }
  0x87   : > { %v279_v25 = vpop.permute.xlu1 %278 }
  0x88   : > { %v284_v31 = vsel %vm161_vm1, %v279_v25, 0 }
  0x8c   : > { %726 = vmatmul.mubr.msk.bf16.vlgmr.msra.gmra.mxu0 %vm161_vm1, %v874_v2 }
  0x8d   : > { %743 = vmatprep.mubr.msk.bf16.mxu0 %vm821_vm0, %v820_v0 }
 0x14c   : > { %v202_v12 = vpop.f32.mrf.mxu0 }
 0x14d   : > { %v214_v13 = vsel %vm213_vm3, %v202_v12, -3.4028235e+38 }
 0x14e   : > { %v727_v14 = vpop.f32.mrf.mxu0  ;;  %v215_v15 = vsel %vm161_vm1, %v214_v13, -inf }
 0x14f   : > { %216 = vmax.xlane.f32.xlu0 %v215_v15 }
 0x150   : > { %v205_v16 = vpop.f32.mrf.mxu0 }
 0x152   : > { %v728_v17 = vpop.f32.mrf.mxu0 }
 0x165   : > { %500 = vrot.lane.b32.xlu0 %v874_v2, %s826_s21 }
 0x1d8   : > { %v217_v20 = vpop.xlane.xlu0 %216 }
 0x1d9   : > { %v218_v21 = vsub.f32 %v214_v13, %v217_v20 }
 0x1db   : > { %v219_v22 = vmul.f32 1.442695, %v218_v21 }
 0x1dc   : > { %v501_v34 = vpop.permute.xlu0 %500 }
 0x1dd   : > { %796 = vpow2.f32 %v219_v22  ;;  %v506_v36 = vsel %vm161_vm1, %v501_v34, 0 }
 0x1ea   : > { %v797_v23 = vpop.eup %796 }
 0x1eb   : > { %v221_v24 = vsel %vm161_vm1, %v797_v23, 0.0 }
 0x1ec   : > { %222 = vadd.xlane.f32.xlu1 %v221_v24 }
 0x1fd   : > { %276 = vrot.lane.b32.xlu1 %v874_v2, %s827_s22 }
 0x201   : > { %389 = vrot.lane.b32.xlu1 %v874_v2, %s828_s23 }
 0x205   : > { %387 = vrot.lane.b32.xlu1 %v874_v2, %s829_s24 }
 0x209   : > { %498 = vrot.lane.b32.xlu1 %v874_v2, %s830_s25 }
 0x275   : > { %v223_v26 = vpop.xlane.xlu1 %222 }
 0x276   : > { %798 = vrcp.f32 %v223_v26 }
 0x279   : > { %v277_v29 = vpop.permute.xlu1 %276 }
 0x27d   : > { %v390_v32 = vpop.permute.xlu1 %389 }
 0x27e   : > { %v395_v33 = vsel %vm161_vm1, %v390_v32, 0 }
 0x281   : > { %v388_v35 = vpop.permute.xlu1 %387 }
 0x283   : > { %v799_v27 = vpop.eup %798 }
 0x284   : > { %v225_v28 = vmul.f32 %v799_v27, %v797_v23 }
 0x285   : > { %v499_v37 = vpop.permute.xlu1 %498 }
 0x286   : > { %v226_v30 = vpack.c.bf16 %v225_v28, %v225_v28 }
 0x288   : > { %732 = vmatmul.mubr.msk.bf16.vlgmr.msra.gmra.mxu1 %vm161_vm1, %v226_v30 }
 0x289   : > { %736 = vmatpush3.bf16.xpose.msra.mxu1 %v284_v31  ;;  %737 = vmatprep.mubr.msk.bf16.mxu1 %vm821_vm0, %v820_v0 }
 0x28a   : > { %747 = vmatprep.subr.bf16.mxu1 %v820_v0 }
 0x290   : > { %738 = vmatmul.mubr.msk.bf16.vlgmr.msra.gmra.mxu1 %vm161_vm1, %v277_v29 }
 0x291   : > { %748 = vmatpush3.bf16.xpose.msra.mxu1 %v395_v33  ;;  %749 = vmatprep.mubr.msk.bf16.mxu1 %vm821_vm0, %v820_v0 }
 0x292   : > { %759 = vmatprep.subr.bf16.mxu1 %v820_v0 }
 0x298   : > { %750 = vmatmul.mubr.msk.bf16.vlgmr.msra.gmra.mxu1 %vm161_vm1, %v388_v35 }
 0x299   : > { %760 = vmatpush3.bf16.xpose.msra.mxu1 %v506_v36  ;;  %761 = vmatprep.mubr.msk.bf16.mxu1 %vm821_vm0, %v820_v0 }
 0x2a0   : > { %762 = vmatmul.mubr.msk.bf16.vlgmr.msra.gmra.mxu1 %vm161_vm1, %v499_v37 }
 0x348   : > { %v918_v38 = vpop.f32.mrf.mxu1 }
 0x34a   : > { %v733_v39 = vpop.f32.mrf.mxu1 }
 0x34c   : > { %v273_v40 = vpop.f32.mrf.mxu1 }
 0x34e   : > { %v734_v41 = vpop.f32.mrf.mxu1 }
 0x350   : > { %v320_v42 = vpop.f32.mrf.mxu1 }
 0x351   : > { %v326_v43 = vsel %vm213_vm3, %v320_v42, -3.4028235e+38 }
 0x352   : > { %v739_v44 = vpop.f32.mrf.mxu1  ;;  %v327_v45 = vsel %vm161_vm1, %v326_v43, -inf }
 0x353   : > { %328 = vmax.xlane.f32.xlu1 %v327_v45 }
 0x354   : > { %v323_v46 = vpop.f32.mrf.mxu1 }
 0x356   : > { %v740_v47 = vpop.f32.mrf.mxu1 }
 0x358   : > { %v431_v48 = vpop.f32.mrf.mxu1 }
 0x359   : > { %v437_v49 = vsel %vm213_vm3, %v431_v48, -3.4028235e+38 }
 0x35a   : > { %v751_v50 = vpop.f32.mrf.mxu1  ;;  %v438_v51 = vsel %vm161_vm1, %v437_v49, -inf }
 0x35b   : > { %439 = vmax.xlane.f32.xlu0 %v438_v51 }
 0x35c   : > { %v434_v52 = vpop.f32.mrf.mxu1 }
 0x35e   : > { %v752_v53 = vpop.f32.mrf.mxu1 }
 0x360   : > { %v542_v54 = vpop.f32.mrf.mxu1 }
 0x361   : > { %v548_v55 = vsel %vm213_vm3, %v542_v54, -3.4028235e+38 }
 0x362   : > { %v549_v56 = vsel %vm161_vm1, %v548_v55, -inf  ;;  %v763_v57 = vpop.f32.mrf.mxu1 }
 0x363   : > { %550 = vmax.xlane.f32.xlu1 %v549_v56 }
 0x364   : > { %v545_v58 = vpop.f32.mrf.mxu1 }
 0x366   : > { %v764_v59 = vpop.f32.mrf.mxu1 }
 0x3dc   : > { %v329_v60 = vpop.xlane.xlu1 %328 }
 0x3dd   : > { %v330_v61 = vsub.f32 %v326_v43, %v329_v60 }
 0x3df   : > { %v331_v62 = vmul.f32 1.442695, %v330_v61 }
 0x3e1   : > { %800 = vpow2.f32 %v331_v62 }
 0x3e4   : > { %v440_v8 = vpop.xlane.xlu0 %439 }
 0x3e5   : > { %v441_v9 = vsub.f32 %v437_v49, %v440_v8 }
 0x3e7   : > { %v442_v10 = vmul.f32 1.442695, %v441_v9 }
 0x3ec   : > { %v551_v63 = vpop.xlane.xlu1 %550 }
 0x3ed   : > { %v552_v1 = vsub.f32 %v548_v55, %v551_v63 }
 0x3ee   : > { %v801_v3 = vpop.eup %800 }
 0x3ef   : > { %v553_v4 = vmul.f32 1.442695, %v552_v1  ;;  %v333_v5 = vsel %vm161_vm1, %v801_v3, 0.0 }
 0x3f0   : > { %334 = vadd.xlane.f32.xlu1 %v333_v5 }
 0x3f1   : > { %802 = vpow2.f32 %v553_v4 }
 0x3f2   : > { %804 = vpow2.f32 %v442_v10 }
 0x3fe   : > { %v803_v6 = vpop.eup %802 }
 0x3ff   : > { %v555_v7 = vsel %vm161_vm1, %v803_v6, 0.0  ;;  %v805_v11 = vpop.eup %804 }
 0x400   : > { %556 = vadd.xlane.f32.xlu0 %v555_v7  ;;  %v444_v12 = vsel %vm161_vm1, %v805_v11, 0.0 }
 0x401   : > { %339 = vrot.lane.b32.xlu1 %v874_v2, %s831_s26 }
 0x416   : > { %450 = vrot.lane.b32.xlu0 %v874_v2, %s832_s27 }
 0x425   : > { %445 = vadd.xlane.f32.xlu1 %v444_v12 }
 0x436   : > { %561 = vrot.lane.b32.xlu1 %v874_v2, %s833_s28 }
 0x479   : > { %v335_v13 = vpop.xlane.xlu1 %334 }
 0x47a   : > { %806 = vrcp.f32 %v335_v13 }
 0x47d   : > { %v340_v14 = vpop.permute.xlu1 %339 }
 0x47e   : > { %v345_v15 = vsel %vm232_vm4, %v340_v14, 0 }
 0x47f   : > { %742 = vmatpush3.bf16.msra.mxu0 %v345_v15 }
 0x480   : > { %753 = vmatprep.subr.bf16.mxu0 %v820_v0 }
 0x487   : > { %v807_v16 = vpop.eup %806 }
 0x488   : > { %v337_v17 = vmul.f32 %v807_v16, %v801_v3 }
 0x489   : > { %v557_v18 = vpop.xlane.xlu0 %556 }
 0x48a   : > { %v338_v19 = vpack.c.bf16 %v337_v17, %v337_v17 }
 0x48c   : > { %744 = vmatmul.mubr.msk.bf16.vlgmr.msra.gmra.mxu0 %vm161_vm1, %v338_v19 }
 0x48d   : > { %v451_v20 = vpop.permute.xlu0 %450  ;;  %755 = vmatprep.mubr.msk.bf16.mxu0 %vm821_vm0, %v820_v0 }
 0x48e   : > { %v456_v2 = vsel %vm232_vm4, %v451_v20, 0 }
 0x48f   : > { %754 = vmatpush3.bf16.msra.mxu0 %v456_v2 }
 0x490   : > { %765 = vmatprep.subr.bf16.mxu0 %v820_v0 }
 0x4ae   : > { %v446_v21 = vpop.xlane.xlu1 %445 }
 0x4af   : > { %808 = vrcp.f32 %v446_v21 }
 0x4b0   : > { %810 = vrcp.f32 %v557_v18 }
 0x4b2   : > { %v562_v23 = vpop.permute.xlu1 %561 }
 0x4b3   : > { %v567_v25 = vsel %vm232_vm4, %v562_v23, 0 }
 0x4bc   : > { %v809_v22 = vpop.eup %808 }
 0x4bd   : > { %v448_v24 = vmul.f32 %v809_v22, %v805_v11  ;;  %v811_v27 = vpop.eup %810 }
 0x4be   : > { %v559_v28 = vmul.f32 %v811_v27, %v803_v6 }
 0x4bf   : > { %v449_v26 = vpack.c.bf16 %v448_v24, %v448_v24 }
 0x4c0   : > { %v560_v29 = vpack.c.bf16 %v559_v28, %v559_v28 }
 0x4c1   : > { %756 = vmatmul.mubr.msk.bf16.vlgmr.msra.gmra.mxu0 %vm161_vm1, %v449_v26 }
 0x4c2   : > { %766 = vmatpush3.bf16.msra.mxu0 %v567_v25  ;;  %767 = vmatprep.mubr.msk.bf16.mxu0 %vm821_vm0, %v820_v0 }
 0x4c9   : > { %768 = vmatmul.mubr.msk.bf16.vlgmr.msra.gmra.mxu0 %vm161_vm1, %v560_v29 }
 0x54c   : > { %v381_v30 = vpop.f32.mrf.mxu0 }
 0x54d   : > { %610 = vrot.lane.b32.xlu1 %v381_v30, %s834_s29 }
 0x54e   : > { %v745_v31 = vpop.f32.mrf.mxu0 }
 0x550   : > { %v384_v32 = vpop.f32.mrf.mxu0 }
 0x552   : > { %v746_v33 = vpop.f32.mrf.mxu0 }
 0x581   : > { %v492_v34 = vpop.f32.mrf.mxu0 }
 0x582   : > { %614 = vrot.lane.b32.xlu0 %v492_v34, %s835_s30 }
 0x583   : > { %v757_v35 = vpop.f32.mrf.mxu0 }
 0x585   : > { %v495_v36 = vpop.f32.mrf.mxu0 }
 0x587   : > { %v758_v37 = vpop.f32.mrf.mxu0 }
 0x589   : > { %v603_v39 = vpop.f32.mrf.mxu0 }
 0x58a   : > { %618 = vrot.lane.b32.xlu1 %v603_v39, %s836_s3 }
 0x58b   : > { %v769_v0 = vpop.f32.mrf.mxu0 }
 0x58d   : > { %v606_v40 = vpop.f32.mrf.mxu0 }
 0x58f   : > { %v770_v41 = vpop.f32.mrf.mxu0 }
 0x5bf   : > { %v611_v42 = vpop.permute.xlu1 %610 }
 0x5c0   : > { %v621_v44 = vsel %vm161_vm1, %v918_v38, %v611_v42 }
 0x5f4   : > { %v615_v43 = vpop.permute.xlu0 %614 }
 0x5f5   : > { %v623_v45 = vsel %vm622_vm5, %v621_v44, %v615_v43 }
 0x5fc   : > { %v619_v46 = vpop.permute.xlu1 %618 }
 0x5fd   : > { %v625_v47 = vsel %vm624_vm6, %v623_v45, %v619_v46 }
 0x5fe   : > { %627 = vst.msk [vmem:[%s152_s6] sm:$0xff] %vm626_vm7, %v625_v47 }
 0x5ff PF: > { %s12_s9 = sadd.s32 1, %s818_s9  }
 0x600   : > { %p9_p4 = scmp.ge.s32.totalorder %s12_s9, 4  }
 0x602   :  { %11 = sbr.rel (!%p9_p4) target bundleno = 1 (0x1), region = 61 }

// kernel: text_encoder_forward.16
= control target key start
LH: loop header
LB: loop body
LE: loop exit
PB: predicated region body
PF: predicated region fallthrough
CT: control target
= control target key end

     0   :  { %vm28_vm0 = vcmask 261120   ;;  %v222_v0 = vmov 0.0   ;;  %vm223_vm1 = vmmov 0   ;;  %vm68_vm2 = vcmask 523264   ;;  %s308_s1 = inlined_call_operand.vmem [shape: bf16[64,32], index: 1, kind: input, shape index: {}]   ;;  %s309_s0 = inlined_call_operand.vmem [shape: f32[16,64], index: 0, kind: input, shape index: {}]   ;;  %s310_s2 = inlined_call_operand.vmem [shape: f32[1,32], index: 2, kind: input, shape index: {}]   ;;  %s311_s3 = inlined_call_operand.vmem [shape: f32[16,32], index: 3, kind: input, shape index: {}]   ;;  %s312_s4 = inlined_call_operand.vmem [shape: f32[1,32], index: 4, kind: input, shape index: {}]   ;;  %s313_s5 = inlined_call_operand.vmem [shape: f32[1,32], index: 5, kind: input, shape index: {}]   ;;  %s314_s6 = inlined_call_operand.vmem [shape: f32[16,32], index: 6, kind: output, shape index: {}]  }
   0x1   :  { %200 = vmatprep.subr.bf16.mxu0 %v222_v0  ;;  %v214_v1 = vld [vmem:[%s308_s1 + $0x18] sm:$0xff]   ;;  %208 = vmatprep.mubr.msk.bf16.mxu0 %vm223_vm1, %v222_v0  ;;  %29 = vst.msk [vmem:[#allocation2] sm:$0xff] %vm28_vm0, %v222_v0  ;;  %30 = vst.msk [vmem:[#allocation2 + $0x8] sm:$0xff] %vm28_vm0, %v222_v0  ;;  %v215_v2 = vld [vmem:[%s308_s1 + $0x10] sm:$0xff]  }
   0x2   :  { %201 = vmatpush3.bf16.msra.mxu0 %v214_v1  ;;  %v216_v3 = vld [vmem:[%s308_s1 + $0x8] sm:$0xff]   ;;  %v217_v4 = vld [vmem:[%s308_s1] sm:$0xff]  }
   0x3   :  { %202 = vmatprep.subr.bf16.mxu0 %v222_v0  ;;  %v33_v5 = vld [vmem:[%s309_s0] sm:$0xff]  ;;  %v34_v6 = vld [vmem:[%s309_s0 + $0x8] sm:$0xff] }
   0x4   :  { %v35_v7 = vpack.c.bf16 %v34_v6, %v33_v5  ;;  %v192_v16 = vld [vmem:[%s310_s2] ss:$0 sm:$0xff]  ;;  %v133_v22 = vld [vmem:[%s311_s3 + $0x8] sm:$0xff] }
   0x5   :  { %v132_v18 = vld [vmem:[%s311_s3] sm:$0xff] }
   0x6   :  { %203 = vmatpush3.bf16.msra.mxu0 %v215_v2  ;;  %v193_v44 = vld [vmem:[%s312_s4] ss:$0 sm:$0xff] }
   0x7   :  { %204 = vmatprep.subr.bf16.mxu0 %v222_v0  ;;  %v194_v46 = vld [vmem:[%s313_s5] ss:$0 sm:$0xff] }
   0x8   :  { %v31_v8 = vld [vmem:[#allocation2] sm:$0xff]  ;;  %v32_v12 = vld [vmem:[#allocation2 + $0x8] sm:$0xff] }
   0xa   :  { %205 = vmatpush3.bf16.msra.mxu0 %v216_v3 }
   0xb   :  { %206 = vmatprep.subr.bf16.mxu0 %v222_v0 }
   0xe   :  { %207 = vmatpush3.bf16.msra.mxu0 %v217_v4 }
  0x11   :  { %209 = vmatmul.mubr.msk.bf16.vlgmr.msra.gmra.mxu0 %vm68_vm2, %v35_v7 }
  0xd1   :  { %v106_v9 = vpop.f32.mrf.mxu0 }
  0xd2   :  { %v113_v10 = vadd.f32 %v106_v9, %v31_v8 }
  0xd3   :  { %v210_v11 = vpop.f32.mrf.mxu0 }
  0xd4   :  { %116 = vst.msk [vmem:[#allocation2] sm:$0xff] %vm28_vm0, %v113_v10 }
  0xd5   :  { %v109_v13 = vpop.f32.mrf.mxu0 }
  0xd6   :  { %v114_v14 = vadd.f32 %v109_v13, %v32_v12 }
  0xd7   :  { %v211_v15 = vpop.f32.mrf.mxu0 }
  0xd8   :  { %117 = vst.msk [vmem:[#allocation2 + $0x8] sm:$0xff] %vm28_vm0, %v114_v14 }
  0xdb   :  { %v121_v17 = vld [vmem:[#allocation2] sm:$0xff] }
  0xdc   :  { %v130_v19 = vadd.f32 %v192_v16, %v121_v17 }
  0xde   :  { %v134_v20 = vadd.f32 %v132_v18, %v130_v19 }
  0xdf   :  { %v122_v21 = vld [vmem:[#allocation2 + $0x8] sm:$0xff] }
  0xe0   :  { %v136_v23 = vsel %vm28_vm0, %v134_v20, 0.0  ;;  %v131_v24 = vadd.f32 %v192_v16, %v122_v21 }
  0xe1   :  { %137 = vadd.xlane.f32.xlu0 %v136_v23 }
  0xe2   :  { %v135_v25 = vadd.f32 %v133_v22, %v131_v24 }
  0xe4   :  { %v139_v26 = vsel %vm28_vm0, %v135_v25, 0.0 }
  0xe5   :  { %140 = vadd.xlane.f32.xlu0 %v139_v26 }
 0x16a   :  { %v138_v27 = vpop.xlane.xlu0 %137 }
 0x16b   :  { %v143_v28 = vmul.f32 0.03125, %v138_v27 }
 0x16d   :  { %v145_v29 = vsub.f32 %v134_v20, %v143_v28 }
 0x16e   :  { %v141_v30 = vpop.xlane.xlu0 %140 }
 0x16f   :  { %v144_v31 = vmul.f32 0.03125, %v141_v30  ;;  %v147_v32 = vmul.f32 %v145_v29, %v145_v29 }
 0x171   :  { %v146_v33 = vsub.f32 %v135_v25, %v144_v31  ;;  %v149_v34 = vsel %vm28_vm0, %v147_v32, 0.0 }
 0x172   :  { %150 = vadd.xlane.f32.xlu1 %v149_v34 }
 0x173   :  { %v148_v35 = vmul.f32 %v146_v33, %v146_v33 }
 0x175   :  { %v152_v36 = vsel %vm28_vm0, %v148_v35, 0.0 }
 0x176   :  { %153 = vadd.xlane.f32.xlu1 %v152_v36 }
 0x1fb   :  { %v151_v37 = vpop.xlane.xlu1 %150 }
 0x1fc   :  { %v155_v38 = vmul.f32 0.03125, %v151_v37 }
 0x1fe   :  { %v157_v39 = vadd.f32 1e-12, %v155_v38 }
 0x1ff   :  { %v154_v40 = vpop.xlane.xlu1 %153 }
 0x200   :  { %218 = vrsqrt.f32 %v157_v39  ;;  %v156_v41 = vmul.f32 0.03125, %v154_v40 }
 0x202   :  { %v158_v42 = vadd.f32 1e-12, %v156_v41 }
 0x204   :  { %220 = vrsqrt.f32 %v158_v42 }
 0x20d   :  { %v219_v43 = vpop.eup %218 }
 0x20e   :  { %v161_v45 = vmul.f32 %v219_v43, %v145_v29 }
 0x210   :  { %v170_v47 = vmul.f32 %v193_v44, %v161_v45 }
 0x211   :  { %v221_v48 = vpop.eup %220 }
 0x212   :  { %v179_v49 = vadd.f32 %v194_v46, %v170_v47  ;;  %v162_v50 = vmul.f32 %v221_v48, %v146_v33 }
 0x214   :  { %181 = vst.msk [vmem:[%s314_s6] sm:$0xff] %vm28_vm0, %v179_v49  ;;  %v171_v51 = vmul.f32 %v193_v44, %v162_v50 }
 0x216   :  { %v180_v52 = vadd.f32 %v194_v46, %v171_v51 }
 0x218   :  { %182 = vst.msk [vmem:[%s314_s6 + $0x8] sm:$0xff] %vm28_vm0, %v180_v52 }

// kernel: text_encoder_forward.15
= control target key start
LH: loop header
LB: loop body
LE: loop exit
PB: predicated region body
PF: predicated region fallthrough
CT: control target
= control target key end

     0   :  { %vm19_vm0 = vcmask 523264   ;;  %v154_v0 = vmov 0.0   ;;  %vm155_vm1 = vmmov 0   ;;  %vm43_vm2 = vcmask 261120   ;;  %s203_s1 = inlined_call_operand.vmem [shape: bf16[32,64], index: 1, kind: input, shape index: {}]   ;;  %s204_s0 = inlined_call_operand.vmem [shape: f32[16,32], index: 0, kind: input, shape index: {}]   ;;  %s205_s2 = inlined_call_operand.vmem [shape: f32[1,64], index: 2, kind: input, shape index: {}]   ;;  %s206_s3 = inlined_call_operand.vmem [shape: f32[16,64], index: 3, kind: output, shape index: {}]  }
   0x1   :  { %138 = vmatprep.subr.bf16.mxu0 %v154_v0  ;;  %v148_v1 = vld [vmem:[%s203_s1 + $0x8] sm:$0xff]   ;;  %142 = vmatprep.mubr.msk.bf16.mxu0 %vm155_vm1, %v154_v0  ;;  %20 = vst.msk [vmem:[#allocation2] sm:$0xff] %vm19_vm0, %v154_v0  ;;  %21 = vst.msk [vmem:[#allocation2 + $0x8] sm:$0xff] %vm19_vm0, %v154_v0  ;;  %v149_v2 = vld [vmem:[%s203_s1] sm:$0xff]  }
   0x2   :  { %139 = vmatpush3.bf16.msra.mxu0 %v148_v1  ;;  %v24_v3 = vld [vmem:[%s204_s0] sm:$0xff]  ;;  %v25_v4 = vld [vmem:[%s204_s0 + $0x8] sm:$0xff] }
   0x3   :  { %140 = vmatprep.subr.bf16.mxu0 %v154_v0  ;;  %v26_v5 = vpack.c.bf16 %v25_v4, %v24_v3  ;;  %v134_v14 = vld [vmem:[%s205_s2] ss:$0 sm:$0xff] }
   0x6   :  { %141 = vmatpush3.bf16.msra.mxu0 %v149_v2 }
   0x8   :  { %v22_v6 = vld [vmem:[#allocation2] sm:$0xff]  ;;  %v23_v10 = vld [vmem:[#allocation2 + $0x8] sm:$0xff] }
   0x9   :  { %143 = vmatmul.mubr.msk.bf16.vlgmr.msra.gmra.mxu0 %vm43_vm2, %v26_v5 }
  0xc9   :  { %v81_v7 = vpop.f32.mrf.mxu0 }
  0xca   :  { %v88_v8 = vadd.f32 %v81_v7, %v22_v6 }
  0xcb   :  { %v144_v9 = vpop.f32.mrf.mxu0 }
  0xcc   :  { %91 = vst.msk [vmem:[#allocation2] sm:$0xff] %vm19_vm0, %v88_v8 }
  0xcd   :  { %v84_v11 = vpop.f32.mrf.mxu0 }
  0xce   :  { %v89_v12 = vadd.f32 %v84_v11, %v23_v10 }
  0xcf   :  { %v145_v13 = vpop.f32.mrf.mxu0 }
  0xd0   :  { %92 = vst.msk [vmem:[#allocation2 + $0x8] sm:$0xff] %vm19_vm0, %v89_v12 }
  0xd3   :  { %v96_v15 = vld [vmem:[#allocation2] sm:$0xff] }
  0xd4   :  { %v105_v16 = vadd.f32 %v134_v14, %v96_v15 }
  0xd6   :  { %v109_v17 = vmul.f32 0.044715, %v105_v16  ;;  %v107_v30 = vmul.f32 0.5, %v105_v16 }
  0xd7   :  { %v97_v18 = vld [vmem:[#allocation2 + $0x8] sm:$0xff] }
  0xd8   :  { %v111_v19 = vmul.f32 %v109_v17, %v105_v16  ;;  %v106_v20 = vadd.f32 %v134_v14, %v97_v18 }
  0xda   :  { %v113_v21 = vmul.f32 %v111_v19, %v105_v16  ;;  %v110_v22 = vmul.f32 0.044715, %v106_v20  ;;  %v108_v34 = vmul.f32 0.5, %v106_v20 }
  0xdc   :  { %v115_v23 = vadd.f32 %v113_v21, %v105_v16  ;;  %v112_v24 = vmul.f32 %v110_v22, %v106_v20 }
  0xde   :  { %v117_v25 = vmul.f32 0.7978846, %v115_v23  ;;  %v114_v26 = vmul.f32 %v112_v24, %v106_v20 }
  0xe0   :  { %150 = vtanh.f32 %v117_v25  ;;  %v116_v27 = vadd.f32 %v114_v26, %v106_v20 }
  0xe2   :  { %v118_v28 = vmul.f32 0.7978846, %v116_v27 }
  0xe4   :  { %152 = vtanh.f32 %v118_v28 }
  0xed   :  { %v151_v29 = vpop.eup %150 }
  0xee   :  { %v121_v31 = vadd.f32 1.0, %v151_v29 }
  0xf0   :  { %v123_v32 = vmul.f32 %v121_v31, %v107_v30 }
  0xf1   :  { %v153_v33 = vpop.eup %152 }
  0xf2   :  { %125 = vst.msk [vmem:[%s206_s3] sm:$0xff] %vm19_vm0, %v123_v32  ;;  %v122_v35 = vadd.f32 1.0, %v153_v33 }
  0xf4   :  { %v124_v36 = vmul.f32 %v122_v35, %v108_v34 }
  0xf6   :  { %126 = vst.msk [vmem:[%s206_s3 + $0x8] sm:$0xff] %vm19_vm0, %v124_v36 }

</bundles_post_ra>
